<compile_context>
chip_gen: v5e
topology: v5e:2x2
jax: 0.10.0
libtpu: 0.0.40
codegen_flags: <defaults>
</compile_context>

<pallas_src>
import jax
import jax.numpy as jnp
import numpy as np
from jax.experimental import pallas as pl
from jax.experimental.pallas import tpu as pltpu


def _round_up(x, m):
    return (x + m - 1) // m * m


def _pad2d(a, rows, cols):
    return jnp.pad(a, ((0, rows - a.shape[0]), (0, cols - a.shape[1])))


def _sage_ae_kernel(x_ref, src_ref, dst_ref,
                    w1_ref, b1_ref, w2_ref, b2_ref, wd_ref, bd_ref,
                    xhat_ref, elog_ref):
    """Fused 2-layer GraphSAGE encoder + linear decoder + edge logits.

    Inputs (whole arrays in VMEM):
      x    : [Np, Dp]    bf16 padded node features (members then providers)
      src  : [2E, 1]     int32 source node of each directed edge (pad = Np sentinel)
      dst  : [1, 2E]     int32 destination node of each directed edge (pad = Np)
      w1   : [Dp, 2H]    bf16 packed [W1_l | W1_r]
      w2   : [H, 2L]     bf16 packed [W2_l | W2_r]
      wd   : [L, Dp]     bf16 decoder weight
      b*   : [1, *]      f32 biases
    Edge layout: rows [0, E) are provider->member (src = provider, dst = member),
    rows [E, 2E) are member->provider (src = member). Hence Gsrc[:E] gathers the
    provider latent and Gsrc[E:] gathers the member latent for the edge logits.
    """
    f32 = jnp.float32
    bf16 = jnp.bfloat16

    x = x_ref[...]                                   # [Np, Dp] bf16
    n_pad = x.shape[0]
    e2 = src_ref.shape[0]                            # 2 * E_pad
    e_pad = e2 // 2
    h_pad = b1_ref.shape[1]
    l_pad = b2_ref.shape[1]

    # --- graph operators from index vectors (no dense N^2 adjacency) --------
    src_col = src_ref[...]                           # [2E, 1] int32
    dst_row = dst_ref[...]                           # [1, 2E] int32
    iota_lane = jax.lax.broadcasted_iota(jnp.int32, (e2, n_pad), 1)
    iota_subl = jax.lax.broadcasted_iota(jnp.int32, (n_pad, e2), 0)
    # 0/1 one-hot operators; pad slots hold sentinel >= Np -> all-zero rows.
    g_src = jnp.where(iota_lane == src_col, f32(1), f32(0)).astype(bf16)   # [2E, Np]
    g_dst_f32 = jnp.where(iota_subl == dst_row, f32(1), f32(0))            # [Np, 2E]
    g_dst_t = g_dst_f32.astype(bf16)
    deg = jnp.sum(g_dst_f32, axis=1, keepdims=True)                        # [Np, 1]
    inv_deg = 1.0 / jnp.maximum(deg, 1.0)            # f32, matches PyG mean (deg 0 -> 0)

    def mean_agg(t_f32):
        """Mean aggregation of per-node features t over in-neighbors."""
        e_feat = jnp.dot(g_src, t_f32.astype(bf16),
                         preferred_element_type=f32)                       # [2E, F]
        s = jnp.dot(g_dst_t, e_feat.astype(bf16),
                    preferred_element_type=f32)                            # [Np, F]
        return s * inv_deg

    # --- SAGEConv 1 (fused l|r weights):  relu( agg(x W1l) + x W1r + b1 ) ---
    t1 = jnp.dot(x, w1_ref[...], preferred_element_type=f32)               # [Np, 2H]
    h1 = jnp.maximum(mean_agg(t1[:, :h_pad]) + t1[:, h_pad:] + b1_ref[...], 0.0)
    h1_bf = h1.astype(bf16)
    # Dropout is the identity in eval mode.

    # --- SAGEConv 2:  agg(h1 W2l) + h1 W2r + b2 ------------------------------
    t2 = jnp.dot(h1_bf, w2_ref[...], preferred_element_type=f32)           # [Np, 2L]
    z = mean_agg(t2[:, :l_pad]) + t2[:, l_pad:] + b2_ref[...]              # [Np, L] f32
    z_bf = z.astype(bf16)

    # --- Decoder (lane-dense [Np, Dp] store) ---------------------------------
    x_hat = jnp.dot(z_bf, wd_ref[...], preferred_element_type=f32) + bd_ref[...]
    xhat_ref[...] = x_hat.astype(xhat_ref.dtype)

    # --- Edge logits: one stacked gather matmul, lane-dense output slab ------
    zg = jnp.dot(g_src, z_bf, preferred_element_type=f32)                  # [2E, L]
    zp = zg[:e_pad]       # provider latent per edge
    zm = zg[e_pad:]       # member latent per edge
    logits = jnp.sum(zp * zm, axis=-1, keepdims=True)                      # [E, 1] f32
    elog_ref[...] = jnp.broadcast_to(logits, elog_ref.shape).astype(elog_ref.dtype)


def sage_autoencoder_forward(x_member, x_provider, edge_index, params):
    """Full SAGEAutoencoder.forward equivalent (eval mode)."""
    n_m, d_m = x_member.shape
    n_p, d_p = x_provider.shape
    in_dim = max(d_m, d_p)
    n_total = n_m + n_p
    n_edges = edge_index.shape[1]
    hidden = params["w1l"].shape[1]
    latent = params["w2l"].shape[1]

    # --- padded sizes: everything 128-lane / 128-row aligned -----------------
    n_pad = _round_up(n_total, 128)
    d_pad = _round_up(in_dim, 128)
    h_pad = _round_up(hidden, 128)
    l_pad = _round_up(latent, 128)
    e_pad = _round_up(max(n_edges, 1), 128)

    # --- node features: pad feature dims, concat, pad, bf16 ------------------
    xm = jnp.pad(x_member, ((0, 0), (0, in_dim - d_m)))
    xp = jnp.pad(x_provider, ((0, 0), (0, in_dim - d_p)))
    x = jnp.concatenate([xm, xp], axis=0).astype(jnp.float32)
    x_padded = _pad2d(x, n_pad, d_pad).astype(jnp.bfloat16)

    # --- graph as small index vectors (no dense scatters in the wrapper) -----
    # Pad slots get sentinel n_pad (out of range) -> zero one-hot rows in-kernel.
    p_idx = edge_index[0].astype(jnp.int32)
    m_idx = edge_index[1].astype(jnp.int32)
    pad_e = e_pad - n_edges
    src_pm = jnp.pad(p_idx + n_m, (0, pad_e), constant_values=n_pad)  # provider -> member
    dst_pm = jnp.pad(m_idx, (0, pad_e), constant_values=n_pad)
    src_mp = jnp.pad(m_idx, (0, pad_e), constant_values=n_pad)        # member -> provider
    dst_mp = jnp.pad(p_idx + n_m, (0, pad_e), constant_values=n_pad)
    src_col = jnp.concatenate([src_pm, src_mp]).reshape(2 * e_pad, 1)
    dst_row = jnp.concatenate([dst_pm, dst_mp]).reshape(1, 2 * e_pad)

    # --- fused / padded weights (bf16 operands, f32 biases) ------------------
    w1cat = jnp.concatenate([_pad2d(params["w1l"], d_pad, h_pad),
                             _pad2d(params["w1r"], d_pad, h_pad)],
                            axis=1).astype(jnp.bfloat16)               # [D, 2H]
    w2cat = jnp.concatenate([_pad2d(params["w2l"], h_pad, l_pad),
                             _pad2d(params["w2r"], h_pad, l_pad)],
                            axis=1).astype(jnp.bfloat16)               # [H, 2L]
    wd = _pad2d(params["wd"], l_pad, d_pad).astype(jnp.bfloat16)
    b1 = _pad2d(params["b1"], 1, h_pad).astype(jnp.float32)
    b2 = _pad2d(params["b2"], 1, l_pad).astype(jnp.float32)
    bd = _pad2d(params["bd"], 1, d_pad).astype(jnp.float32)

    # --- advisory cost estimate so XLA overlaps wrapper prep with the call ---
    e2 = 2 * e_pad
    flops = 2 * (n_pad * d_pad * 2 * h_pad          # x @ W1cat
                 + e2 * n_pad * h_pad * 2           # layer-1 gather + scatter
                 + n_pad * h_pad * 2 * l_pad        # h1 @ W2cat
                 + e2 * n_pad * l_pad * 2           # layer-2 gather + scatter
                 + n_pad * l_pad * d_pad            # decoder
                 + e2 * n_pad * l_pad)              # edge-logit gather
    bytes_accessed = (x_padded.size * 2 + w1cat.size * 2 + w2cat.size * 2
                      + wd.size * 2 + (b1.size + b2.size + bd.size) * 4
                      + (src_col.size + dst_row.size) * 4
                      + n_pad * d_pad * 4 + e_pad * 128 * 4)
    cost = pl.CostEstimate(flops=flops, transcendentals=0,
                           bytes_accessed=bytes_accessed)

    # Single fused pallas_call, whole arrays in VMEM (< 1 MiB total, far under
    # the default scoped limits on v5e/v6e/v7x). See header for the row-tiled
    # grid plan once the graph outgrows VMEM.
    vmem = pl.BlockSpec(memory_space=pltpu.MemorySpace.VMEM)
    x_hat_pad, elog_pad = pl.pallas_call(
        _sage_ae_kernel,
        out_shape=(jax.ShapeDtypeStruct((n_pad, d_pad), jnp.float32),
                   jax.ShapeDtypeStruct((e_pad, 128), jnp.float32)),
        in_specs=[vmem] * 9,
        out_specs=(vmem, vmem),
        cost_estimate=cost,
    )(x_padded, src_col, dst_row, w1cat, b1, w2cat, b2, wd, bd)

    x_hat_member = x_hat_pad[:n_m, :in_dim]
    x_hat_provider = x_hat_pad[n_m:n_total, :in_dim]
    edge_logits = elog_pad[:n_edges, 0]
    return x_hat_member, x_hat_provider, edge_logits


def init_params(key, in_dim, hidden_dim, latent_dim):
    """SAGEConv (lin_l with bias, lin_r without) + decoder Linear, weights [in, out]."""
    ks = jax.random.split(key, 5)

    def lin(k, fan_in, fan_out, with_bias=True):
        kw, kb = jax.random.split(k)
        bound = 1.0 / np.sqrt(fan_in)
        w = jax.random.uniform(kw, (fan_in, fan_out), jnp.float32, -bound, bound)
        b = (jax.random.uniform(kb, (1, fan_out), jnp.float32, -bound, bound)
             if with_bias else None)
        return w, b

    w1l, b1 = lin(ks[0], in_dim, hidden_dim)
    w1r, _ = lin(ks[1], in_dim, hidden_dim, with_bias=False)
    w2l, b2 = lin(ks[2], hidden_dim, latent_dim)
    w2r, _ = lin(ks[3], hidden_dim, latent_dim, with_bias=False)
    wd, bd = lin(ks[4], latent_dim, in_dim)
    return dict(w1l=w1l, w1r=w1r, b1=b1, w2l=w2l, w2r=w2r, b2=b2, wd=wd, bd=bd)


def _ref_forward(x_member, x_provider, edge_index, params):
    """Pure-JAX f32 reference (highest matmul precision) for correctness check."""
    n_m, d_m = x_member.shape
    n_p, d_p = x_provider.shape
    in_dim = max(d_m, d_p)
    xm = jnp.pad(x_member, ((0, 0), (0, in_dim - d_m)))
    xp = jnp.pad(x_provider, ((0, 0), (0, in_dim - d_p)))
    x = jnp.concatenate([xm, xp], axis=0)
    n = n_m + n_p

    p_idx = edge_index[0].astype(jnp.int32)
    m_idx = edge_index[1].astype(jnp.int32)
    src = jnp.concatenate([p_idx + n_m, m_idx])
    dst = jnp.concatenate([m_idx, p_idx + n_m])
    adj = jnp.zeros((n, n), jnp.float32).at[dst, src].add(1.0)
    a_norm = adj / jnp.maximum(adj.sum(axis=1, keepdims=True), 1.0)

    hp = jax.lax.Precision.HIGHEST

    def mm(a, b):
        return jnp.dot(a, b, precision=hp)

    h1 = jnp.maximum(mm(mm(a_norm, x), params["w1l"])
                     + mm(x, params["w1r"]) + params["b1"], 0.0)
    z = (mm(mm(a_norm, h1), params["w2l"])
         + mm(h1, params["w2r"]) + params["b2"])
    x_hat = mm(z, params["wd"]) + params["bd"]

    member_z, provider_z = z[:n_m], z[n_m:]
    logits = jnp.sum(provider_z[p_idx] * member_z[m_idx], axis=-1)
    return x_hat[:n_m], x_hat[n_m:], logits


if __name__ == "__main__":
    member_dim, provider_dim = 16, 24
    hidden_dim, latent_dim = 32, 8
    n_member, n_provider = 48, 32
    n_edges = 12

    key = jax.random.PRNGKey(0)
    k_xm, k_xp, k_par, k_e1, k_e2 = jax.random.split(key, 5)

    x_member = jax.random.normal(k_xm, (n_member, member_dim), jnp.float32)
    x_provider = jax.random.normal(k_xp, (n_provider, provider_dim), jnp.float32)
    # edge_index for ('provider','to','member'): row 0 = provider idx, row 1 = member idx
    edge_index = jnp.stack([
        jax.random.randint(k_e1, (n_edges,), 0, n_provider),
        jax.random.randint(k_e2, (n_edges,), 0, n_member),
    ], axis=0).astype(jnp.int32)

    in_dim = max(member_dim, provider_dim)
    params = init_params(k_par, in_dim, hidden_dim, latent_dim)

    x_hat_m, x_hat_p, edge_logits = sage_autoencoder_forward(
        x_member, x_provider, edge_index, params)
    jax.block_until_ready((x_hat_m, x_hat_p, edge_logits))

    # bf16 MXU operands + (A@x)@W -> A@(x@W) reassociation => bf16-level tolerance.
    ref_m, ref_p, ref_e = _ref_forward(x_member, x_provider, edge_index, params)
    np.testing.assert_allclose(np.asarray(x_hat_m), np.asarray(ref_m),
                               rtol=5e-2, atol=2e-2)
    np.testing.assert_allclose(np.asarray(x_hat_p), np.asarray(ref_p),
                               rtol=5e-2, atol=2e-2)
    np.testing.assert_allclose(np.asarray(edge_logits), np.asarray(ref_e),
                               rtol=5e-2, atol=2e-2)
    assert x_hat_m.shape == (n_member, in_dim)
    assert x_hat_p.shape == (n_provider, in_dim)
    assert edge_logits.shape == (n_edges,)

    print("KERNEL_OK")
</pallas_src>

<mosaic_0001>
module attributes {stable_mosaic.version = 11 : i64} {
  func.func @_sage_ae_kernel(%arg0: memref<128x128xbf16, #tpu.memory_space<vmem>>, %arg1: memref<256x1xi32, #tpu.memory_space<vmem>>, %arg2: memref<1x256xi32, #tpu.memory_space<vmem>>, %arg3: memref<128x256xbf16, #tpu.memory_space<vmem>>, %arg4: memref<1x128xf32, #tpu.memory_space<vmem>>, %arg5: memref<128x256xbf16, #tpu.memory_space<vmem>>, %arg6: memref<1x128xf32, #tpu.memory_space<vmem>>, %arg7: memref<128x128xbf16, #tpu.memory_space<vmem>>, %arg8: memref<1x128xf32, #tpu.memory_space<vmem>>, %arg9: memref<128x128xf32, #tpu.memory_space<vmem>>, %arg10: memref<128x128xf32, #tpu.memory_space<vmem>>) attributes {dimension_semantics = [], scalar_prefetch = 0 : i64, scratch_operands = 0 : i64, tpu.core_type = #tpu.core_type<tc>} {
    %c0 = arith.constant 0 : index
    %c0_0 = arith.constant 0 : index
    %0 = vector.load %arg0[%c0, %c0_0] : memref<128x128xbf16, #tpu.memory_space<vmem>>, vector<128x128xbf16>
    %c0_1 = arith.constant 0 : index
    %c0_2 = arith.constant 0 : index
    %1 = vector.load %arg1[%c0_1, %c0_2] : memref<256x1xi32, #tpu.memory_space<vmem>>, vector<256x1xi32>
    %c0_3 = arith.constant 0 : index
    %c0_4 = arith.constant 0 : index
    %2 = vector.load %arg2[%c0_3, %c0_4] : memref<1x256xi32, #tpu.memory_space<vmem>>, vector<1x256xi32>
    %3 = tpu.iota {dimensions = array<i32: 1>} : vector<256x128xi32>
    %4 = tpu.iota {dimensions = array<i32: 0>} : vector<128x256xi32>
    %5 = vector.broadcast %1 : vector<256x1xi32> to vector<256x128xi32>
    %6 = arith.cmpi eq, %3, %5 : vector<256x128xi32>
    %cst = arith.constant 1.000000e+00 : f32
    %cst_5 = arith.constant 0.000000e+00 : f32
    %7 = vector.broadcast %cst : f32 to vector<256x128xf32>
    %8 = vector.broadcast %cst_5 : f32 to vector<256x128xf32>
    %9 = arith.select %6, %7, %8 : vector<256x128xi1>, vector<256x128xf32>
    %10 = arith.truncf %9 : vector<256x128xf32> to vector<256x128xbf16>
    %11 = vector.broadcast %2 : vector<1x256xi32> to vector<128x256xi32>
    %12 = arith.cmpi eq, %4, %11 : vector<128x256xi32>
    %cst_6 = arith.constant 1.000000e+00 : f32
    %cst_7 = arith.constant 0.000000e+00 : f32
    %13 = vector.broadcast %cst_6 : f32 to vector<128x256xf32>
    %14 = vector.broadcast %cst_7 : f32 to vector<128x256xf32>
    %15 = arith.select %12, %13, %14 : vector<128x256xi1>, vector<128x256xf32>
    %16 = arith.truncf %15 : vector<128x256xf32> to vector<128x256xbf16>
    %cst_8 = arith.constant dense<0.000000e+00> : vector<128xf32>
    %17 = vector.multi_reduction <add>, %15, %cst_8 [1] : vector<128x256xf32> to vector<128xf32>
    %18 = vector.shape_cast %17 : vector<128xf32> to vector<128x1xf32>
    %cst_9 = arith.constant 1.000000e+00 : f32
    %19 = vector.broadcast %cst_9 : f32 to vector<128x1xf32>
    %20 = arith.maximumf %18, %19 : vector<128x1xf32>
    %cst_10 = arith.constant 1.000000e+00 : f32
    %21 = vector.broadcast %cst_10 : f32 to vector<128x1xf32>
    %22 = arith.divf %21, %20 : vector<128x1xf32>
    %c0_11 = arith.constant 0 : index
    %c0_12 = arith.constant 0 : index
    %23 = vector.load %arg3[%c0_11, %c0_12] : memref<128x256xbf16, #tpu.memory_space<vmem>>, vector<128x256xbf16>
    %cst_13 = arith.constant dense<0.000000e+00> : vector<128x256xf32>
    %24 = tpu.matmul %0, %23, %cst_13 {dimension_numbers = #tpu.dot_dimension_numbers<[1], [0], [0], [1], [0, 0, 1, 1], [], []>} : vector<128x128xbf16>, vector<128x256xbf16>, vector<128x256xf32> -> vector<128x256xf32>
    %25 = vector.extract_strided_slice %24 {offsets = [0, 0], sizes = [128, 128], strides = [1, 1]} : vector<128x256xf32> to vector<128x128xf32>
    %26 = arith.truncf %25 : vector<128x128xf32> to vector<128x128xbf16>
    %cst_14 = arith.constant dense<0.000000e+00> : vector<256x128xf32>
    %27 = tpu.matmul %10, %26, %cst_14 {dimension_numbers = #tpu.dot_dimension_numbers<[1], [0], [0], [1], [0, 0, 1, 1], [], []>} : vector<256x128xbf16>, vector<128x128xbf16>, vector<256x128xf32> -> vector<256x128xf32>
    %28 = arith.truncf %27 : vector<256x128xf32> to vector<256x128xbf16>
    %cst_15 = arith.constant dense<0.000000e+00> : vector<128x128xf32>
    %29 = tpu.matmul %16, %28, %cst_15 {dimension_numbers = #tpu.dot_dimension_numbers<[1], [0], [0], [1], [0, 0, 1, 1], [], []>} : vector<128x256xbf16>, vector<256x128xbf16>, vector<128x128xf32> -> vector<128x128xf32>
    %30 = vector.broadcast %22 : vector<128x1xf32> to vector<128x128xf32>
    %31 = arith.mulf %29, %30 : vector<128x128xf32>
    %32 = vector.extract_strided_slice %24 {offsets = [0, 128], sizes = [128, 128], strides = [1, 1]} : vector<128x256xf32> to vector<128x128xf32>
    %33 = arith.addf %31, %32 : vector<128x128xf32>
    %c0_16 = arith.constant 0 : index
    %c0_17 = arith.constant 0 : index
    %34 = vector.load %arg4[%c0_16, %c0_17] : memref<1x128xf32, #tpu.memory_space<vmem>>, vector<1x128xf32>
    %35 = vector.broadcast %34 : vector<1x128xf32> to vector<128x128xf32>
    %36 = arith.addf %33, %35 : vector<128x128xf32>
    %cst_18 = arith.constant 0.000000e+00 : f32
    %37 = vector.broadcast %cst_18 : f32 to vector<128x128xf32>
    %38 = arith.maximumf %36, %37 : vector<128x128xf32>
    %39 = arith.truncf %38 : vector<128x128xf32> to vector<128x128xbf16>
    %c0_19 = arith.constant 0 : index
    %c0_20 = arith.constant 0 : index
    %40 = vector.load %arg5[%c0_19, %c0_20] : memref<128x256xbf16, #tpu.memory_space<vmem>>, vector<128x256xbf16>
    %cst_21 = arith.constant dense<0.000000e+00> : vector<128x256xf32>
    %41 = tpu.matmul %39, %40, %cst_21 {dimension_numbers = #tpu.dot_dimension_numbers<[1], [0], [0], [1], [0, 0, 1, 1], [], []>} : vector<128x128xbf16>, vector<128x256xbf16>, vector<128x256xf32> -> vector<128x256xf32>
    %42 = vector.extract_strided_slice %41 {offsets = [0, 0], sizes = [128, 128], strides = [1, 1]} : vector<128x256xf32> to vector<128x128xf32>
    %43 = arith.truncf %42 : vector<128x128xf32> to vector<128x128xbf16>
    %cst_22 = arith.constant dense<0.000000e+00> : vector<256x128xf32>
    %44 = tpu.matmul %10, %43, %cst_22 {dimension_numbers = #tpu.dot_dimension_numbers<[1], [0], [0], [1], [0, 0, 1, 1], [], []>} : vector<256x128xbf16>, vector<128x128xbf16>, vector<256x128xf32> -> vector<256x128xf32>
    %45 = arith.truncf %44 : vector<256x128xf32> to vector<256x128xbf16>
    %cst_23 = arith.constant dense<0.000000e+00> : vector<128x128xf32>
    %46 = tpu.matmul %16, %45, %cst_23 {dimension_numbers = #tpu.dot_dimension_numbers<[1], [0], [0], [1], [0, 0, 1, 1], [], []>} : vector<128x256xbf16>, vector<256x128xbf16>, vector<128x128xf32> -> vector<128x128xf32>
    %47 = vector.broadcast %22 : vector<128x1xf32> to vector<128x128xf32>
    %48 = arith.mulf %46, %47 : vector<128x128xf32>
    %49 = vector.extract_strided_slice %41 {offsets = [0, 128], sizes = [128, 128], strides = [1, 1]} : vector<128x256xf32> to vector<128x128xf32>
    %50 = arith.addf %48, %49 : vector<128x128xf32>
    %c0_24 = arith.constant 0 : index
    %c0_25 = arith.constant 0 : index
    %51 = vector.load %arg6[%c0_24, %c0_25] : memref<1x128xf32, #tpu.memory_space<vmem>>, vector<1x128xf32>
    %52 = vector.broadcast %51 : vector<1x128xf32> to vector<128x128xf32>
    %53 = arith.addf %50, %52 : vector<128x128xf32>
    %54 = arith.truncf %53 : vector<128x128xf32> to vector<128x128xbf16>
    %c0_26 = arith.constant 0 : index
    %c0_27 = arith.constant 0 : index
    %55 = vector.load %arg7[%c0_26, %c0_27] : memref<128x128xbf16, #tpu.memory_space<vmem>>, vector<128x128xbf16>
    %cst_28 = arith.constant dense<0.000000e+00> : vector<128x128xf32>
    %56 = tpu.matmul %54, %55, %cst_28 {dimension_numbers = #tpu.dot_dimension_numbers<[1], [0], [0], [1], [0, 0, 1, 1], [], []>} : vector<128x128xbf16>, vector<128x128xbf16>, vector<128x128xf32> -> vector<128x128xf32>
    %c0_29 = arith.constant 0 : index
    %c0_30 = arith.constant 0 : index
    %57 = vector.load %arg8[%c0_29, %c0_30] : memref<1x128xf32, #tpu.memory_space<vmem>>, vector<1x128xf32>
    %58 = vector.broadcast %57 : vector<1x128xf32> to vector<128x128xf32>
    %59 = arith.addf %56, %58 : vector<128x128xf32>
    %c0_31 = arith.constant 0 : index
    %c0_32 = arith.constant 0 : index
    %60 = vector.load %arg9[%c0_31, %c0_32] : memref<128x128xf32, #tpu.memory_space<vmem>>, vector<128x128xf32>
    tpu.vector_store %arg9[%c0_31, %c0_32], %59 {strides = array<i32>} : memref<128x128xf32, #tpu.memory_space<vmem>>, vector<128x128xf32>,
    %cst_33 = arith.constant dense<0.000000e+00> : vector<256x128xf32>
    %61 = tpu.matmul %10, %54, %cst_33 {dimension_numbers = #tpu.dot_dimension_numbers<[1], [0], [0], [1], [0, 0, 1, 1], [], []>} : vector<256x128xbf16>, vector<128x128xbf16>, vector<256x128xf32> -> vector<256x128xf32>
    %62 = vector.extract_strided_slice %61 {offsets = [0, 0], sizes = [128, 128], strides = [1, 1]} : vector<256x128xf32> to vector<128x128xf32>
    %63 = vector.extract_strided_slice %61 {offsets = [128, 0], sizes = [128, 128], strides = [1, 1]} : vector<256x128xf32> to vector<128x128xf32>
    %64 = arith.mulf %62, %63 : vector<128x128xf32>
    %cst_34 = arith.constant dense<0.000000e+00> : vector<128xf32>
    %65 = vector.multi_reduction <add>, %64, %cst_34 [1] : vector<128x128xf32> to vector<128xf32>
    %66 = vector.shape_cast %65 : vector<128xf32> to vector<128x1xf32>
    %67 = vector.shape_cast %66 : vector<128x1xf32> to vector<128x1xf32>
    %68 = vector.broadcast %67 : vector<128x1xf32> to vector<128x128xf32>
    %c0_35 = arith.constant 0 : index
    %c0_36 = arith.constant 0 : index
    %69 = vector.load %arg10[%c0_35, %c0_36] : memref<128x128xf32, #tpu.memory_space<vmem>>, vector<128x128xf32>
    tpu.vector_store %arg10[%c0_35, %c0_36], %68 {strides = array<i32>} : memref<128x128xf32, #tpu.memory_space<vmem>>, vector<128x128xf32>,
    return
  }
}

</mosaic_0001>

<bundles_post_ra>
// kernel: tpu_custom_call.1
= control target key start
LH: loop header
LB: loop body
LE: loop exit
PB: predicated region body
PF: predicated region fallthrough
CT: control target
= control target key end

     0   :  { %16 = vsyncpa [#allocation3], 0  ;;  %s4275_s0 = inlined_call_operand.hbm [shape: bf16[128,128], index: 0, kind: input, shape index: {}]   ;;  %s4276_s1 = inlined_call_operand.vmem [shape: s32[256,1], index: 1, kind: input, shape index: {}]   ;;  %s4277_s2 = inlined_call_operand.vmem [shape: s32[1,256], index: 2, kind: input, shape index: {}]   ;;  %s4278_s3 = inlined_call_operand.vmem [shape: bf16[128,256], index: 3, kind: input, shape index: {}]   ;;  %s4279_s4 = inlined_call_operand.vmem [shape: f32[1,128], index: 4, kind: input, shape index: {}]   ;;  %s4280_s5 = inlined_call_operand.vmem [shape: bf16[128,256], index: 5, kind: input, shape index: {}]   ;;  %s4281_s6 = inlined_call_operand.vmem [shape: f32[1,128], index: 6, kind: input, shape index: {}]   ;;  %s4282_s7 = inlined_call_operand.hbm [shape: bf16[128,128], index: 7, kind: input, shape index: {}]   ;;  %s4283_s8 = inlined_call_operand.vmem [shape: f32[1,128], index: 8, kind: input, shape index: {}]   ;;  %s4284_s9 = inlined_call_operand.hbm [shape: f32[128,128], index: 9, kind: output, shape index: {0}]   ;;  %s4285_s10 = inlined_call_operand.hbm [shape: f32[128,128], index: 10, kind: output, shape index: {1}]  }
   0x1   :  { %17 = vsyncpa [#allocation6], 0 }
   0x2   :  { %18 = vsyncpa [#allocation4], 0 }
   0x3   :  { %19 = vsyncpa [#allocation9], 0  ;;  %s24_s15 = sshll.u32 %s4275_s0, 4  ;;  %s2593_s16 = smov [#allocation2]   ;;  %s25_s15 = int_to_ptr.hbm [resolvable:$true] %s24_s15 }
   0x4   :  { %s26_s17 = sshll.u32 %s2593_s16, 4  ;;  %s49_s20 = sshll.u32 %s4282_s7, 4  ;;  %s27_s17 = int_to_ptr.vmem [resolvable:$true] %s26_s17  ;;  %s50_s20 = int_to_ptr.hbm [resolvable:$true] %s49_s20 }
   0x5   :  { %s2594_s21 = smov 64   ;;  %s2595_s22 = smov 4  }
   0x6   :  { %32 = dma.hbm_to_vmem [thread:$0]  %s25_s15, 1024, %s27_s17, [#allocation3], %s2594_s21, %s2594_s21, %s2595_s22  }
   0x7   :  { %s2596_s23 = smov [#allocation5]  }
   0x8   :  { %s51_s24 = sshll.u32 %s2596_s23, 4  ;;  %s52_s24 = int_to_ptr.vmem [resolvable:$true] %s51_s24 }
   0x9   :  { %57 = dma.hbm_to_vmem [thread:$0]  %s50_s20, 1024, %s52_s24, [#allocation6], %s2594_s21, %s2594_s21, %s2595_s22  }
   0xa   :  { %2585 = dma.done.wait [#allocation3], 1024  }
   0xb   :  { %2586 = vsyncadd [#allocation3], 4294966272 }
   0xc   :  { %2587 = dma.done.wait [#allocation6], 1024  }
   0xd   :  { %2588 = vsyncadd [#allocation6], 4294966272  ;;  %v2106_v0 = vld [vmem:[%s4278_s3 + $0x70] sm:$0xf]  ;;  %v2391_v1 = vld [vmem:[%s4278_s3 + $0x74] sm:$0xf0] }
   0xe   :  { %v2098_v2 = vld [vmem:[%s4278_s3 + $0x60] sm:$0xf]  ;;  %v2107_v3 = vor.u32 %v2391_v1, %v2106_v0  ;;  %v2389_v4 = vld [vmem:[%s4278_s3 + $0x64] sm:$0xf0]  ;;  %v2090_v6 = vld [vmem:[%s4278_s3 + $0x50] sm:$0xf] }
   0xf   :  { %v2099_v5 = vor.u32 %v2389_v4, %v2098_v2  ;;  %v2387_v7 = vld [vmem:[%s4278_s3 + $0x54] sm:$0xf0]  ;;  %v2082_v9 = vld [vmem:[%s4278_s3 + $0x40] sm:$0xf]  ;;  %v2385_v10 = vld [vmem:[%s4278_s3 + $0x44] sm:$0xf0] }
  0x10   :  { %2416 = vmatpush.bf16.msra.mxu3 %v2107_v3  ;;  %842 = vmatpush.bf16.msra.mxu0 %v2107_v3  ;;  %v2091_v8 = vor.u32 %v2387_v7, %v2090_v6  ;;  %v2083_v11 = vor.u32 %v2385_v10, %v2082_v9  ;;  %v2074_v12 = vld [vmem:[%s4278_s3 + $0x30] sm:$0xf]  ;;  %v2383_v13 = vld [vmem:[%s4278_s3 + $0x34] sm:$0xf0]  ;;  %v2066_v15 = vld [vmem:[%s4278_s3 + $0x20] sm:$0xf] }
  0x11   :  { %v2075_v14 = vor.u32 %v2383_v13, %v2074_v12  ;;  %v2381_v16 = vld [vmem:[%s4278_s3 + $0x24] sm:$0xf0]  ;;  %v2058_v18 = vld [vmem:[%s4278_s3 + $0x10] sm:$0xf]  ;;  %v2379_v19 = vld [vmem:[%s4278_s3 + $0x14] sm:$0xf0] }
  0x12   :  { %v2067_v17 = vor.u32 %v2381_v16, %v2066_v15  ;;  %v2059_v20 = vor.u32 %v2379_v19, %v2058_v18  ;;  %v2050_v21 = vld [vmem:[%s4278_s3] sm:$0xf]  ;;  %v2377_v22 = vld [vmem:[%s4278_s3 + $0x4] sm:$0xf0]  ;;  %v2713_v24 = vld [vmem:[#allocation2 + $0x10] sm:$0xff]  ;;  %v2597_v27 = vmov 0  }
  0x13   :  { %v2051_v23 = vor.u32 %v2377_v22, %v2050_v21  ;;  %v86_v25 = vld [vmem:[%s4276_s1 + $0x10] sm:$0xff]  ;;  %v84_v26 = vld [vmem:[%s4276_s1] sm:$0xff]  ;;  %2452 = vset.pattern.permute.xlu1 %v2597_v27  ;;  %2451 = vset.pattern.permute.xlu0 %v2597_v27  ;;  %v2722_v28 = vld [vmem:[#allocation2 + $0x18] sm:$0xff]  ;;  %s1984_s18 = sshll.u32 %s4284_s9, 4  ;;  %s2601_s19 = smov 128   ;;  %s1985_s18 = int_to_ptr.hbm [resolvable:$true] %s1984_s18 }
  0x14   :  { %2417 = vmatpush.bf16.msra.mxu3 %v2099_v5  ;;  %843 = vmatpush.bf16.msra.mxu0 %v2099_v5  ;;  %v87_v29 = vld [vmem:[%s4276_s1 + $0x18] sm:$0xff]  ;;  %v85_v30 = vld [vmem:[%s4276_s1 + $0x8] sm:$0xff]  ;;  %v90_v32 = vld [vmem:[%s4276_s1 + $0x30] sm:$0xff]  ;;  %s2602_s20 = smov 8   ;;  %s2603_s9 = smov [#allocation8]  }
  0x15   :  { %143 = vperm.xlu1 %2452, %v86_v25   ;;  %137 = vperm.xlu0 %2451, %v84_v26   ;;  %v91_v31 = vld [vmem:[%s4276_s1 + $0x38] sm:$0xff]  ;;  %v2737_v33 = vld [vmem:[#allocation2 + $0x20] sm:$0xff]  ;;  %v94_v34 = vld [vmem:[%s4276_s1 + $0x50] sm:$0xff]  ;;  %s1997_s21 = sshll.u32 %s4285_s10, 4  ;;  %s1998_s21 = int_to_ptr.hbm [resolvable:$true] %s1997_s21 }
  0x16   :  { %2453 = vset.pattern.permute.xlu2 %v2597_v27  ;;  %v93_v35 = vld [vmem:[%s4276_s1 + $0x48] sm:$0xff]  ;;  %v96_v37 = vld [vmem:[%s4276_s1 + $0x60] sm:$0xff]  ;;  %v99_v42 = vld [vmem:[%s4276_s1 + $0x78] sm:$0xff] }
  0x17   :  { %v97_v36 = vld [vmem:[%s4276_s1 + $0x68] sm:$0xff]  ;;  %v2755_v39 = vld [vmem:[#allocation2] sm:$0xff]  ;;  %v2390_v43 = vld [vmem:[%s4278_s3 + $0x74] sm:$0xf] }
  0x18   :  { %2418 = vmatpush.bf16.msra.mxu3 %v2091_v8  ;;  %844 = vmatpush.bf16.msra.mxu0 %v2091_v8  ;;  %v2752_v38 = vld [vmem:[#allocation2 + $0x28] sm:$0xff]  ;;  %v88_v40 = vld [vmem:[%s4276_s1 + $0x20] sm:$0xff]  ;;  %v2108_v45 = vld [vmem:[%s4278_s3 + $0x78] sm:$0xf0] }
  0x19   :  { %v100_v41 = vld [vmem:[%s4276_s1 + $0x80] sm:$0xff]  ;;  %149 = vperm.xlu2 %2453, %v88_v40   ;;  %v89_v44 = vld [vmem:[%s4276_s1 + $0x28] sm:$0xff]  ;;  %v103_v46 = vld [vmem:[%s4276_s1 + $0x98] sm:$0xff]  ;;  %v2111_v47 = vor.u32 %v2390_v43, %v2108_v45 }
  0x1a   :  { %v2388_v48 = vld [vmem:[%s4278_s3 + $0x64] sm:$0xf]  ;;  %v2100_v49 = vld [vmem:[%s4278_s3 + $0x68] sm:$0xf0]  ;;  %v102_v50 = vld [vmem:[%s4276_s1 + $0x90] sm:$0xff] }
  0x1b   :  { %2424 = vmatpush.bf16.msra.mxu2 %v2111_v47  ;;  %v2103_v51 = vor.u32 %v2388_v48, %v2100_v49  ;;  %v2386_v52 = vld [vmem:[%s4278_s3 + $0x54] sm:$0xf]  ;;  %v2092_v53 = vld [vmem:[%s4278_s3 + $0x58] sm:$0xf0]  ;;  %v2384_v56 = vld [vmem:[%s4278_s3 + $0x44] sm:$0xf] }
  0x1c   :  { %2419 = vmatpush.bf16.msra.mxu3 %v2083_v11  ;;  %845 = vmatpush.bf16.msra.mxu0 %v2083_v11  ;;  %v2794_v54 = vld [vmem:[#allocation2 + $0x30] sm:$0xff]  ;;  %v2095_v55 = vor.u32 %v2386_v52, %v2092_v53  ;;  %v2084_v57 = vld [vmem:[%s4278_s3 + $0x48] sm:$0xf0]  ;;  %v92_v59 = vld [vmem:[%s4276_s1 + $0x40] sm:$0xff] }
  0x1d   :  { %146 = vperm.xlu1 %2452, %v87_v29   ;;  %140 = vperm.xlu0 %2451, %v85_v30   ;;  %v2802_v58 = vld [vmem:[#allocation2 + $0x8] sm:$0xff]  ;;  %v106_v60 = vld [vmem:[%s4276_s1 + $0xb0] sm:$0xff]  ;;  %v2087_v62 = vor.u32 %v2384_v56, %v2084_v57  ;;  %v95_v63 = vld [vmem:[%s4276_s1 + $0x58] sm:$0xff] }
  0x1e   :  { %v105_v61 = vld [vmem:[%s4276_s1 + $0xa8] sm:$0xff]  ;;  %v108_v1 = vld [vmem:[%s4276_s1 + $0xc0] sm:$0xff]  ;;  %v2375_v2 = vld [vmem:[#allocation2 + $0x38] sm:$0xff] }
  0x1f   :  { %2425 = vmatpush.bf16.msra.mxu2 %v2103_v51  ;;  %v109_v0 = vld [vmem:[%s4276_s1 + $0xc8] sm:$0xff]  ;;  %v98_v3 = vld [vmem:[%s4276_s1 + $0x70] sm:$0xff]  ;;  %v112_v4 = vld [vmem:[%s4276_s1 + $0xe0] sm:$0xff] }
  0x20   :  { %2420 = vmatpush.bf16.msra.mxu3 %v2075_v14  ;;  %846 = vmatpush.bf16.msra.mxu0 %v2075_v14  ;;  %v111_v5 = vld [vmem:[%s4276_s1 + $0xd8] sm:$0xff]  ;;  %v101_v6 = vld [vmem:[%s4276_s1 + $0x88] sm:$0xff]  ;;  %v114_v8 = vld [vmem:[%s4276_s1 + $0xf0] sm:$0xff] }
  0x21   :  { %152 = vperm.xlu2 %2453, %v89_v44   ;;  %v115_v7 = vld [vmem:[%s4276_s1 + $0xf8] sm:$0xff]  ;;  %v2382_v9 = vld [vmem:[%s4278_s3 + $0x34] sm:$0xf]  ;;  %v104_v11 = vld [vmem:[%s4276_s1 + $0xa0] sm:$0xff] }
  0x22   :  { %v2076_v10 = vld [vmem:[%s4278_s3 + $0x38] sm:$0xf0]  ;;  %v2380_v13 = vld [vmem:[%s4278_s3 + $0x24] sm:$0xf]  ;;  %v2068_v14 = vld [vmem:[%s4278_s3 + $0x28] sm:$0xf0] }
  0x23   :  { %2426 = vmatpush.bf16.msra.mxu2 %v2095_v55  ;;  %v2079_v12 = vor.u32 %v2382_v9, %v2076_v10  ;;  %v2071_v15 = vor.u32 %v2380_v13, %v2068_v14  ;;  %v2378_v16 = vld [vmem:[%s4278_s3 + $0x14] sm:$0xf]  ;;  %v107_v18 = vld [vmem:[%s4276_s1 + $0xb8] sm:$0xff]  ;;  %v2052_v21 = vld [vmem:[%s4278_s3 + $0x8] sm:$0xf0] }
  0x24   :  { %2421 = vmatpush.bf16.msra.mxu3 %v2067_v17  ;;  %847 = vmatpush.bf16.msra.mxu0 %v2067_v17  ;;  %v2060_v17 = vld [vmem:[%s4278_s3 + $0x18] sm:$0xf0]  ;;  %v113_v26 = vld [vmem:[%s4276_s1 + $0xe8] sm:$0xff] }
  0x25   :  { %158 = vperm.xlu1 %2452, %v91_v31   ;;  %155 = vperm.xlu0 %2451, %v90_v32   ;;  %v2063_v19 = vor.u32 %v2378_v16, %v2060_v17 }
  0x27   :  { %2427 = vmatpush.bf16.msra.mxu2 %v2087_v62 }
  0x28   :  { %2422 = vmatpush.bf16.msra.mxu3 %v2059_v20  ;;  %848 = vmatpush.bf16.msra.mxu0 %v2059_v20  ;;  %v2376_v20 = vld [vmem:[%s4278_s3 + $0x4] sm:$0xf] }
  0x29   :  { %161 = vperm.xlu2 %2453, %v92_v59   ;;  %v2055_v22 = vor.u32 %v2376_v20, %v2052_v21 }
  0x2b   :  { %2428 = vmatpush.bf16.msra.mxu2 %v2079_v12 }
  0x2c   :  { %2423 = vmatpush.bf16.msra.mxu3 %v2051_v23  ;;  %849 = vmatpush.bf16.msra.mxu0 %v2051_v23  ;;  %v110_v23 = vld [vmem:[%s4276_s1 + $0xd0] sm:$0xff]  ;;  %s1995_s1 = sshll.u32 %s2603_s9, 4  ;;  %s1996_s1 = int_to_ptr.vmem [resolvable:$true] %s1995_s1 }
  0x2d   :  { %167 = vperm.xlu1 %2452, %v94_v34   ;;  %164 = vperm.xlu0 %2451, %v93_v35  }
  0x2f   :  { %860 = vmatmul.bf16.vlgmr.msra.gmra.mxu3 %v2713_v24  ;;  %850 = vmatmul.bf16.vlgmr.msra.gmra.mxu0 %v2755_v39 }
  0x30   :  { %891 = vmatpush.bf16.msrb.mxu0 %v2111_v47  ;;  %2429 = vmatpush.bf16.msra.mxu2 %v2071_v15  ;;  %v117_v47 = vlaneseq }
  0x31   :  { %170 = vperm.xlu2 %2453, %v95_v63  }
  0x34   :  { %892 = vmatpush.bf16.msrb.mxu0 %v2103_v51  ;;  %2430 = vmatpush.bf16.msra.mxu2 %v2063_v19 }
  0x35   :  { %176 = vperm.xlu1 %2452, %v97_v36   ;;  %173 = vperm.xlu0 %2451, %v96_v37  }
  0x38   :  { %893 = vmatpush.bf16.msrb.mxu0 %v2095_v55  ;;  %2431 = vmatpush.bf16.msra.mxu2 %v2055_v22 }
  0x39   :  { %179 = vperm.xlu2 %2453, %v98_v3  }
  0x3b   :  { %909 = vmatmul.bf16.vlgmr.msra.gmra.mxu2 %v2713_v24 }
  0x3c   :  { %894 = vmatpush.bf16.msrb.mxu0 %v2087_v62 }
  0x3d   :  { %185 = vperm.xlu1 %2452, %v100_v41   ;;  %182 = vperm.xlu0 %2451, %v99_v42  }
  0x3f   :  { %865 = vmatmul.bf16.gmra.mxu3 %v2722_v28  ;;  %855 = vmatmul.bf16.gmra.mxu0 %v2802_v58 }
  0x40   :  { %895 = vmatpush.bf16.msrb.mxu0 %v2079_v12 }
  0x41   :  { %188 = vperm.xlu2 %2453, %v101_v6  }
  0x44   :  { %896 = vmatpush.bf16.msrb.mxu0 %v2071_v15 }
  0x45   :  { %194 = vperm.xlu1 %2452, %v103_v46   ;;  %191 = vperm.xlu0 %2451, %v102_v50   ;;  %v2886_v50 = vand.u32 127, %v117_v47 }
  0x48   :  { %897 = vmatpush.bf16.msrb.mxu0 %v2063_v19 }
  0x49   :  { %197 = vperm.xlu2 %2453, %v104_v11  }
  0x4b   :  { %914 = vmatmul.bf16.gmra.mxu2 %v2722_v28 }
  0x4c   :  { %898 = vmatpush.bf16.msrb.mxu0 %v2055_v22 }
  0x4d   :  { %203 = vperm.xlu1 %2452, %v106_v60   ;;  %200 = vperm.xlu0 %2451, %v105_v61  }
  0x4f   :  { %870 = vmatmul.bf16.gmra.mxu3 %v2737_v33  ;;  %899 = vmatmul.bf16.vlgmr.msrb.gmra.mxu0 %v2755_v39 }
  0x51   :  { %206 = vperm.xlu2 %2453, %v107_v18  }
  0x55   :  { %212 = vperm.xlu1 %2452, %v109_v0   ;;  %209 = vperm.xlu0 %2451, %v108_v1  }
  0x59   :  { %215 = vperm.xlu2 %2453, %v110_v23  }
  0x5b   :  { %919 = vmatmul.bf16.gmra.mxu2 %v2737_v33 }
  0x5d   :  { %221 = vperm.xlu1 %2452, %v112_v4   ;;  %218 = vperm.xlu0 %2451, %v111_v5  }
  0x5f   :  { %875 = vmatmul.bf16.gmra.mxu3 %v2752_v38  ;;  %904 = vmatmul.bf16.gmra.mxu0 %v2802_v58 }
  0x61   :  { %224 = vperm.xlu2 %2453, %v113_v26  }
  0x65   :  { %230 = vperm.xlu1 %2452, %v115_v7   ;;  %227 = vperm.xlu0 %2451, %v114_v8  }
  0x6b   :  { %924 = vmatmul.bf16.gmra.mxu2 %v2752_v38 }
  0x6f   :  { %880 = vmatmul.bf16.gmra.mxu3 %v2794_v54 }
  0x73   :  { %v150_v59 = vpop.permute.xlu2 %149 }
  0x74   :  { %vm236_vm6 = vcmp.eq.s32.totalorder %v2886_v50, %v150_v59 }
  0x7b   :  { %929 = vmatmul.bf16.gmra.mxu2 %v2794_v54  ;;  %v4315_v54 = vmov 1.0|1.0   ;;  %v153_v61 = vpop.permute.xlu2 %152 }
  0x7c   :  { %vm237_vm7 = vcmp.eq.s32.totalorder %v2886_v50, %v153_v61 }
  0x7d   :  { %vm2912_vm8 = vmpackc.low %vm237_vm7, %vm236_vm6 }
  0x7f   :  { %885 = vmatmul.bf16.gmra.mxu3 %v2375_v2 }
  0x83   :  { %v162_v6 = vpop.permute.xlu2 %161 }
  0x84   :  { %vm240_vm13 = vcmp.eq.s32.totalorder %v2886_v50, %v162_v6 }
  0x87   :  { %v138_v45 = vpop.permute.xlu0 %137  ;;  %v144_v55 = vpop.permute.xlu1 %143 }
  0x88   :  { %vm232_vm0 = vcmp.eq.s32.totalorder %v2886_v50, %v138_v45  ;;  %vm234_vm3 = vcmp.eq.s32.totalorder %v2886_v50, %v144_v55 }
  0x8b   :  { %934 = vmatmul.bf16.gmra.mxu2 %v2375_v2  ;;  %v171_v11 = vpop.permute.xlu2 %170 }
  0x8f   :  { %v141_v51 = vpop.permute.xlu0 %140  ;;  %v147_v56 = vpop.permute.xlu1 %146 }
  0x90   :  { %vm233_vm1 = vcmp.eq.s32.totalorder %v2886_v50, %v141_v51  ;;  %vm235_vm4 = vcmp.eq.s32.totalorder %v2886_v50, %v147_v56 }
  0x91   :  { %vm2890_vm2 = vmpackc.low %vm233_vm1, %vm232_vm0  ;;  %vm243_vm0 = vcmp.eq.s32.totalorder %v2886_v50, %v171_v11  ;;  %v4411_v11 = vmov 0 }
  0x92   :  { %vm2901_vm5 = vmpackc.low %vm235_vm4, %vm234_vm3 }
  0x93   :  { %v180_v20 = vpop.permute.xlu2 %179 }
  0x97   :  { %v159_v0 = vpop.permute.xlu1 %158  ;;  %v156_v1 = vpop.permute.xlu0 %155 }
  0x98   :  { %vm239_vm9 = vcmp.eq.s32.totalorder %v2886_v50, %v159_v0  ;;  %vm238_vm10 = vcmp.eq.s32.totalorder %v2886_v50, %v156_v1  ;;  %v4408_v0 = vmov 0 }
  0x99   :  { %vm2925_vm11 = vmpackc.low %vm239_vm9, %vm238_vm10  ;;  %vm246_vm9 = vcmp.eq.s32.totalorder %v2886_v50, %v180_v20 }
  0x9f   :  { %v165_v5 = vpop.permute.xlu0 %164  ;;  %v168_v10 = vpop.permute.xlu1 %167 }
  0xa0   :  { %vm241_vm12 = vcmp.eq.s32.totalorder %v2886_v50, %v165_v5  ;;  %vm242_vm15 = vcmp.eq.s32.totalorder %v2886_v50, %v168_v10 }
  0xa1   :  { %vm2936_vm14 = vmpackc.low %vm241_vm12, %vm240_vm13 }
  0xa2   :  { %vm2949_vm1 = vmpackc.low %vm243_vm0, %vm242_vm15 }
  0xa7   :  { %v177_v14 = vpop.permute.xlu1 %176  ;;  %v174_v15 = vpop.permute.xlu0 %173 }
  0xa8   :  { %vm245_vm3 = vcmp.eq.s32.totalorder %v2886_v50, %v177_v14  ;;  %vm244_vm4 = vcmp.eq.s32.totalorder %v2886_v50, %v174_v15 }
  0xa9   :  { %vm2962_vm6 = vmpackc.low %vm245_vm3, %vm244_vm4 }
  0xac   :  { %v851_v37 = vpop.f32.mrf.mxu0 }
  0xaf   :  { %v183_v19 = vpop.permute.xlu0 %182  ;;  %v186_v23 = vpop.permute.xlu1 %185 }
  0xb0   :  { %vm247_vm7 = vcmp.eq.s32.totalorder %v2886_v50, %v183_v19  ;;  %vm248_vm12 = vcmp.eq.s32.totalorder %v2886_v50, %v186_v23  ;;  %v4414_v23 = vmov 0 }
  0xb1   :  { %vm2973_vm10 = vmpackc.low %vm247_vm7, %vm246_vm9 }
  0xb2   :  { %v861_v25 = vpop.f32.mrf.mxu3 }
  0xb4   :  { %v853_v41 = vpop.f32.mrf.mxu0 }
  0xb5   :  { %v940_v52 = vpack.c.bf16 %v853_v41, %v851_v37 }
  0xba   :  { %v863_v27 = vpop.f32.mrf.mxu3 }
  0xbb   :  { %v942_v46 = vpack.c.bf16 %v863_v27, %v861_v25  ;;  %v189_v25 = vpop.permute.xlu2 %188  ;;  %v4394_v27 = vmov 0 }
  0xbc   :  { %v856_v43 = vpop.f32.mrf.mxu0  ;;  %vm249_vm13 = vcmp.eq.s32.totalorder %v2886_v50, %v189_v25 }
  0xbd   :  { %vm2986_vm15 = vmpackc.low %vm249_vm13, %vm248_vm12 }
  0xbe   :  { %v2899_v57 = vpop.f32.mrf.mxu2  ;;  %v4395_v27 = vsel %vm2986_vm15, 4294967295, %v4394_v27 }
  0xc2   :  { %v866_v29 = vpop.f32.mrf.mxu3 }
  0xc3   :  { %v198_v37 = vpop.permute.xlu2 %197 }
  0xc4   :  { %v858_v48 = vpop.f32.mrf.mxu0  ;;  %vm252_vm9 = vcmp.eq.s32.totalorder %v2886_v50, %v198_v37 }
  0xc5   :  { %v941_v49 = vpack.c.bf16 %v858_v48, %v856_v43 }
  0xc6   :  { %v2908_v60 = vpop.f32.mrf.mxu2 }
  0xca   :  { %v868_v30 = vpop.f32.mrf.mxu3 }
  0xcb   :  { %v943_v44 = vpack.c.bf16 %v868_v30, %v866_v29  ;;  %v195_v30 = vpop.permute.xlu1 %194 }
  0xcc   :  { %vm251_vm0 = vcmp.eq.s32.totalorder %v2886_v50, %v195_v30 }
  0xce   :  { %v2919_v63 = vpop.f32.mrf.mxu2 }
  0xd2   :  { %v871_v31 = vpop.f32.mrf.mxu3 }
  0xd6   :  { %v2921_v2 = vpop.f32.mrf.mxu2 }
  0xda   :  { %v873_v24 = vpop.f32.mrf.mxu3 }
  0xdb   :  { %v944_v38 = vpack.c.bf16 %v873_v24, %v871_v31  ;;  %v192_v31 = vpop.permute.xlu0 %191 }
  0xdc   :  { %vm250_vm3 = vcmp.eq.s32.totalorder %v2886_v50, %v192_v31 }
  0xdd   :  { %vm3001_vm4 = vmpackc.low %vm251_vm0, %vm250_vm3 }
  0xde   :  { %v2932_v4 = vpop.f32.mrf.mxu2 }
  0xe2   :  { %v876_v32 = vpop.f32.mrf.mxu3 }
  0xe6   :  { %v2940_v8 = vpop.f32.mrf.mxu2 }
  0xea   :  { %v878_v34 = vpop.f32.mrf.mxu3 }
  0xeb   :  { %v945_v33 = vpack.c.bf16 %v878_v34, %v876_v32  ;;  %v4396_v34 = vmov 0 }
  0xec   :  { %v4397_v34 = vsel %vm3001_vm4, 4294967295, %v4396_v34 }
  0xed   :  { %4398 = vst [vmem:[#allocation14_spill] sm:$0xff] %v4397_v34 }
  0xee   :  { %v2945_v9 = vpop.f32.mrf.mxu2 }
  0xf2   :  { %v881_v35 = vpop.f32.mrf.mxu3 }
  0xf6   :  { %v2956_v13 = vpop.f32.mrf.mxu2 }
  0xfa   :  { %v883_v36 = vpop.f32.mrf.mxu3 }
  0xfb   :  { %v946_v42 = vpack.c.bf16 %v883_v36, %v881_v35  ;;  %v201_v36 = vpop.permute.xlu0 %200 }
  0xfc   :  { %vm253_vm7 = vcmp.eq.s32.totalorder %v2886_v50, %v201_v36 }
  0xfd   :  { %vm3016_vm12 = vmpackc.low %vm253_vm7, %vm252_vm9 }
  0xfe   :  { %v2960_v16 = vpop.f32.mrf.mxu2 }
 0x102   :  { %v886_v28 = vpop.f32.mrf.mxu3 }
 0x103   :  { %v210_v48 = vpop.permute.xlu0 %209 }
 0x104   :  { %vm256_vm9 = vcmp.eq.s32.totalorder %v2886_v50, %v210_v48 }
 0x106   :  { %v2969_v18 = vpop.f32.mrf.mxu2 }
 0x10a   :  { %v888_v39 = vpop.f32.mrf.mxu3 }
 0x10b   :  { %v947_v40 = vpack.c.bf16 %v888_v39, %v886_v28  ;;  %v219_v59 = vpop.permute.xlu0 %218 }
 0x10d   :  { %948 = vmatpush.bf16.msrb.mxu2 %v947_v40  ;;  %v4399_v40 = vmov 0 }
 0x10e   :  { %v2980_v22 = vpop.f32.mrf.mxu2  ;;  %v4400_v40 = vsel %vm3016_vm12, 4294967295, %v4399_v40 }
 0x10f   :  { %4401 = vst [vmem:[#allocation15_spill] sm:$0xff] %v4400_v40 }
 0x111   :  { %949 = vmatpush.bf16.msrb.mxu2 %v946_v42  ;;  %v204_v42 = vpop.permute.xlu1 %203 }
 0x112   :  { %vm254_vm13 = vcmp.eq.s32.totalorder %v2886_v50, %v204_v42 }
 0x113   :  { %v228_v19 = vpop.permute.xlu0 %227 }
 0x115   :  { %950 = vmatpush.bf16.msrb.mxu2 %v945_v33  ;;  %v207_v33 = vpop.permute.xlu2 %206 }
 0x116   :  { %v2982_v26 = vpop.f32.mrf.mxu2  ;;  %vm255_vm0 = vcmp.eq.s32.totalorder %v2886_v50, %v207_v33 }
 0x117   :  { %vm3025_vm3 = vmpackc.low %vm255_vm0, %vm254_vm13  ;;  %vm259_vm13 = vcmp.eq.s32.totalorder %v2886_v50, %v219_v59 }
 0x119   :  { %951 = vmatpush.bf16.msrb.mxu2 %v944_v38 }
 0x11d   :  { %952 = vmatpush.bf16.msrb.mxu2 %v943_v44  ;;  %v4402_v44 = vmov 0  ;;  %v216_v56 = vpop.permute.xlu2 %215 }
 0x11e   :  { %v4403_v44 = vsel %vm3025_vm3, 4294967295, %v4402_v44  ;;  %vm258_vm0 = vcmp.eq.s32.totalorder %v2886_v50, %v216_v56 }
 0x11f   :  { %4404 = vst [vmem:[#allocation16_spill] sm:$0xff] %v4403_v44 }
 0x121   :  { %953 = vmatpush.bf16.msrb.mxu2 %v942_v46  ;;  %v213_v46 = vpop.permute.xlu1 %212 }
 0x122   :  { %vm257_vm7 = vcmp.eq.s32.totalorder %v2886_v50, %v213_v46 }
 0x125   :  { %954 = vmatpush.bf16.msrb.mxu2 %v941_v49  ;;  %v225_v5 = vpop.permute.xlu2 %224 }
 0x129   :  { %955 = vmatpush.bf16.msrb.mxu2 %v940_v52  ;;  %v4405_v52 = vmov 0  ;;  %v222_v6 = vpop.permute.xlu1 %221 }
 0x12c   :  { %2113 = vmatmul.msk.bf16.vlgmr.msrb.gmra.mxu2 %vm2890_vm2, %v4315_v54 }
 0x131   :  { %v231_v15 = vpop.permute.xlu1 %230 }
 0x13c   :  { %2115 = vmatmul.msk.bf16.gmra.mxu2 %vm2901_vm5, %v4315_v54 }
 0x14c   :  { %2117 = vmatmul.msk.bf16.gmra.mxu2 %vm2912_vm8, %v4315_v54 }
 0x15c   :  { %2119 = vmatmul.msk.bf16.gmra.mxu2 %vm2925_vm11, %v4315_v54 }
 0x16c   :  { %2121 = vmatmul.msk.bf16.gmra.mxu2 %vm2936_vm14, %v4315_v54 }
 0x17c   :  { %2123 = vmatmul.msk.bf16.gmra.mxu2 %vm2949_vm1, %v4315_v54 }
 0x18c   :  { %2125 = vmatmul.msk.bf16.gmra.mxu2 %vm2962_vm6, %v4315_v54 }
 0x19c   :  { %2127 = vmatmul.msk.bf16.gmra.mxu2 %vm2973_vm10, %v4315_v54 }
 0x1ac   :  { %2129 = vmatmul.msk.bf16.gmra.mxu2 %vm2986_vm15, %v4315_v54 }
 0x1af   :  { %v2993_v29 = vpop.f32.mrf.mxu2 }
 0x1b7   :  { %v2995_v24 = vpop.f32.mrf.mxu2 }
 0x1b8   :  { %v1037_v32 = vpack.c.bf16 %v2995_v24, %v2993_v29  ;;  %v116_v29 = vld [vmem:[%s4277_s2] sm:$0x3] }
 0x1bc   :  { %2131 = vmatmul.msk.bf16.gmra.mxu2 %vm3001_vm4, %v4315_v54 }
 0x1bf   :  { %v3008_v35 = vpop.f32.mrf.mxu2 }
 0x1c7   :  { %v3010_v28 = vpop.f32.mrf.mxu2 }
 0x1c8   :  { %v1038_v39 = vpack.c.bf16 %v3010_v28, %v3008_v35 }
 0x1cc   :  { %2133 = vmatmul.msk.bf16.gmra.mxu2 %vm3016_vm12, %v4315_v54  ;;  %vm3034_vm12 = vmpackc.low %vm257_vm7, %vm256_vm9  ;;  %vm260_vm7 = vcmp.eq.s32.totalorder %v2886_v50, %v222_v6  ;;  %vm261_vm9 = vcmp.eq.s32.totalorder %v2886_v50, %v225_v5 }
 0x1cd   :  { %v4406_v52 = vsel %vm3034_vm12, 4294967295, %v4405_v52 }
 0x1ce   :  { %4407 = vst [vmem:[#allocation17_spill] sm:$0xff] %v4406_v52 }
 0x1cf   :  { %v967_v41 = vpop.f32.mrf.mxu2 }
 0x1d7   :  { %v969_v43 = vpop.f32.mrf.mxu2 }
 0x1d8   :  { %v1039_v38 = vpack.c.bf16 %v969_v43, %v967_v41 }
 0x1dc   :  { %2135 = vmatmul.msk.bf16.gmra.mxu2 %vm3025_vm3, %v4315_v54  ;;  %vm3043_vm3 = vmpackc.low %vm259_vm13, %vm258_vm0  ;;  %vm263_vm13 = vcmp.eq.s32.totalorder %v2886_v50, %v231_v15  ;;  %vm262_vm0 = vcmp.eq.s32.totalorder %v2886_v50, %v228_v19 }
 0x1dd   :  { %v4409_v0 = vsel %vm3043_vm3, 4294967295, %v4408_v0 }
 0x1de   :  { %4410 = vst [vmem:[#allocation18_spill] sm:$0xff] %v4409_v0 }
 0x1df   :  { %v972_v45 = vpop.f32.mrf.mxu2 }
 0x1e7   :  { %v974_v49 = vpop.f32.mrf.mxu2 }
 0x1e8   :  { %v1040_v51 = vpack.c.bf16 %v974_v49, %v972_v45  ;;  %v3102_v49 = vperm.slane %v116_v29, 1 }
 0x1ec   :  { %2137 = vmatmul.msk.bf16.gmra.mxu2 %vm3034_vm12, %v4315_v54  ;;  %vm3052_vm12 = vmpackc.low %vm261_vm9, %vm260_vm7 }
 0x1ed   :  { %v4412_v11 = vsel %vm3052_vm12, 4294967295, %v4411_v11 }
 0x1ee   :  { %4413 = vst [vmem:[#allocation19_spill] sm:$0xff] %v4412_v11 }
 0x1ef   :  { %v977_v55 = vpop.f32.mrf.mxu2 }
 0x1f7   :  { %v979_v61 = vpop.f32.mrf.mxu2 }
 0x1f8   :  { %v1041_v28 = vpack.c.bf16 %v979_v61, %v977_v55 }
 0x1fc   :  { %2139 = vmatmul.msk.bf16.gmra.mxu2 %vm3043_vm3, %v4315_v54  ;;  %vm3061_vm3 = vmpackc.low %vm263_vm13, %vm262_vm0 }
 0x1fd   :  { %v4415_v23 = vsel %vm3061_vm3, 4294967295, %v4414_v23 }
 0x1fe   :  { %4416 = vst [vmem:[#allocation20_spill] sm:$0xff] %v4415_v23 }
 0x1ff   :  { %v982_v1 = vpop.f32.mrf.mxu2 }
 0x207   :  { %v984_v10 = vpop.f32.mrf.mxu2 }
 0x208   :  { %v1042_v37 = vpack.c.bf16 %v984_v10, %v982_v1 }
 0x20c   :  { %2141 = vmatmul.msk.bf16.gmra.mxu2 %vm3052_vm12, %v4315_v54 }
 0x20f   :  { %v987_v14 = vpop.f32.mrf.mxu2 }
 0x217   :  { %v989_v20 = vpop.f32.mrf.mxu2 }
 0x218   :  { %v1043_v35 = vpack.c.bf16 %v989_v20, %v987_v14 }
 0x21c   :  { %2143 = vmatmul.msk.bf16.gmra.mxu2 %vm3061_vm3, %v4315_v54 }
 0x21f   :  { %v992_v25 = vpop.f32.mrf.mxu2 }
 0x227   :  { %v994_v30 = vpop.f32.mrf.mxu2 }
 0x228   :  { %v1044_v31 = vpack.c.bf16 %v994_v30, %v992_v25 }
 0x22a   :  { %1053 = vmatpush.bf16.msrb.mxu3 %v1044_v31 }
 0x22e   :  { %1054 = vmatpush.bf16.msrb.mxu3 %v1043_v35 }
 0x22f   :  { %v3068_v36 = vpop.f32.mrf.mxu2 }
 0x232   :  { %1055 = vmatpush.bf16.msrb.mxu3 %v1042_v37 }
 0x236   :  { %1056 = vmatpush.bf16.msrb.mxu3 %v1041_v28 }
 0x237   :  { %v3070_v50 = vpop.f32.mrf.mxu2 }
 0x23a   :  { %1057 = vmatpush.bf16.msrb.mxu3 %v1040_v51 }
 0x23e   :  { %1058 = vmatpush.bf16.msrb.mxu3 %v1039_v38 }
 0x23f   :  { %v3072_v41 = vpop.f32.mrf.mxu2 }
 0x242   :  { %1059 = vmatpush.bf16.msrb.mxu3 %v1038_v39  ;;  %v3092_v39 = vshrl.u32 %v117_v47, 7  ;;  %v2599_v47 = vmov 0.0  }
 0x244   :  { %v3098_v24 = vadd.s32 32, %v3092_v39  ;;  %v3119_v61 = vadd.s32 56, %v3092_v39  ;;  %v3122_v1 = vadd.s32 48, %v3092_v39  ;;  %v3151_v25 = vadd.s32 64, %v3092_v39 }
 0x245   :  { %v3154_v30 = vadd.s32 80, %v3092_v39  ;;  %v3157_v31 = vadd.s32 40, %v3092_v39  ;;  %v122_v52 = vadd.s32 16, %v3092_v39  ;;  %v123_v40 = vadd.s32 24, %v3092_v39 }
 0x246   :  { %1060 = vmatpush.bf16.msrb.mxu3 %v1037_v32  ;;  %v3100_v32 = vperm.slane %v116_v29, 0  ;;  %vm4295_vm9 = vcmp.eq.s32.totalorder %v3098_v24, %v3102_v49  ;;  %vm4296_vm0 = vcmp.eq.s32.totalorder %v3119_v61, %v3102_v49 }
 0x247   :  { %v3077_v42 = vpop.f32.mrf.mxu2  ;;  %v355_v56 = vsel %vm4295_vm9, 1.0, %v2599_v47  ;;  %vm4298_vm9 = vcmp.eq.s32.totalorder %v3122_v1, %v3102_v49  ;;  %v361_v10 = vsel %vm4296_vm0, 1.0, %v2599_v47  ;;  %vm4306_vm3 = vcmp.eq.s32.totalorder %v3157_v31, %v3102_v49 }
 0x248   :  { %vm4294_vm7 = vcmp.eq.s32.totalorder %v3098_v24, %v3100_v32  ;;  %vm4297_vm13 = vcmp.eq.s32.totalorder %v3119_v61, %v3100_v32  ;;  %v359_v15 = vsel %vm4298_vm9, 1.0, %v2599_v47  ;;  %vm4300_vm0 = vcmp.eq.s32.totalorder %v3151_v25, %v3100_v32 }
 0x249   :  { %v354_v55 = vsel %vm4294_vm7, 1.0, %v2599_v47  ;;  %vm4299_vm7 = vcmp.eq.s32.totalorder %v3122_v1, %v3100_v32  ;;  %v360_v6 = vsel %vm4297_vm13, 1.0, %v2599_v47  ;;  %vm4304_vm13 = vcmp.eq.s32.totalorder %v3151_v25, %v3102_v49 }
 0x24a   :  { %v406_v59 = vadd.f32 %v355_v56, %v354_v55  ;;  %v358_v14 = vsel %vm4299_vm7, 1.0, %v2599_v47  ;;  %v415_v19 = vadd.f32 %v361_v10, %v360_v6  ;;  %vm4305_vm9 = vcmp.eq.s32.totalorder %v3154_v30, %v3100_v32 }
 0x24b   :  { %v412_v20 = vadd.f32 %v359_v15, %v358_v14  ;;  %vm4303_vm7 = vcmp.eq.s32.totalorder %v3154_v30, %v3102_v49  ;;  %v362_v37 = vsel %vm4300_vm0, 1.0, %v2599_v47  ;;  %v363_v28 = vsel %vm4304_vm13, 1.0, %v2599_v47 }
 0x24c   :  { %407 = vadd.xlane.f32.xlu2 %v406_v59  ;;  %v366_v29 = vsel %vm4305_vm9, 1.0, %v2599_v47  ;;  %v367_v55 = vsel %vm4303_vm7, 1.0, %v2599_v47  ;;  %v418_v56 = vadd.f32 %v363_v28, %v362_v37  ;;  %vm4308_vm0 = vcmp.eq.s32.totalorder %v3157_v31, %v3100_v32 }
 0x24d   :  { %413 = vadd.xlane.f32.xlu1 %v412_v20  ;;  %v424_v59 = vadd.f32 %v367_v55, %v366_v29  ;;  %v356_v6 = vsel %vm4308_vm0, 1.0, %v2599_v47  ;;  %v357_v10 = vsel %vm4306_vm3, 1.0, %v2599_v47  ;;  %v3198_v15 = vadd.s32 88, %v3092_v39 }
 0x24e   :  { %v409_v14 = vadd.f32 %v357_v10, %v356_v6  ;;  %v3204_v20 = vadd.s32 72, %v3092_v39 }
 0x24f   :  { %v3079_v33 = vpop.f32.mrf.mxu2  ;;  %vm4307_vm7 = vcmp.eq.s32.totalorder %v3198_v15, %v3100_v32  ;;  %vm4309_vm13 = vcmp.eq.s32.totalorder %v3198_v15, %v3102_v49 }
 0x250   :  { %410 = vadd.xlane.f32.xlu0 %v409_v14  ;;  %v368_v28 = vsel %vm4307_vm7, 1.0, %v2599_v47  ;;  %v369_v29 = vsel %vm4309_vm13, 1.0, %v2599_v47  ;;  %vm4313_vm7 = vcmp.eq.s32.totalorder %v3204_v20, %v3100_v32  ;;  %vm4312_vm0 = vcmp.eq.s32.totalorder %v3204_v20, %v3102_v49 }
 0x251   :  { %v364_v10 = vsel %vm4313_vm7, 1.0, %v2599_v47  ;;  %v3241_v14 = vadd.s32 8, %v3092_v39  ;;  %vm314_vm13 = vcmp.eq.s32.totalorder %v3092_v39, %v3100_v32 }
 0x254   :  { %416 = vadd.xlane.f32.xlu2 %v415_v19  ;;  %v3201_v19 = vadd.s32 104, %v3092_v39 }
 0x255   :  { %425 = vadd.xlane.f32.xlu1 %v424_v59  ;;  %v427_v59 = vadd.f32 %v369_v29, %v368_v28  ;;  %v365_v28 = vsel %vm4312_vm0, 1.0, %v2599_v47 }
 0x256   :  { %vm4311_vm9 = vcmp.eq.s32.totalorder %v3201_v19, %v3100_v32  ;;  %vm4310_vm3 = vcmp.eq.s32.totalorder %v3201_v19, %v3102_v49  ;;  %v421_v29 = vadd.f32 %v365_v28, %v364_v10 }
 0x257   :  { %v3081_v43 = vpop.f32.mrf.mxu2  ;;  %v372_v55 = vsel %vm4311_vm9, 1.0, %v2599_v47 }
 0x258   :  { %422 = vadd.xlane.f32.xlu0 %v421_v29  ;;  %v346_v29 = vsel %vm314_vm13, 1.0, %v2599_v47 }
 0x25c   :  { %419 = vadd.xlane.f32.xlu2 %v418_v56  ;;  %v373_v56 = vsel %vm4310_vm3, 1.0, %v2599_v47  ;;  %vm4314_vm3 = vcmp.eq.s32.totalorder %v3241_v14, %v3100_v32 }
 0x25d   :  { %v433_v6 = vadd.f32 %v373_v56, %v372_v55  ;;  %vm3257_vm9 = vmpackc.low %vm4314_vm3, %vm314_vm13  ;;  %v4417_v55 = vmov 0  ;;  %v3262_v56 = vadd.s32 112, %v3092_v39  ;;  %vm4340_vm3 = vcmp.eq.s32.totalorder %v3092_v39, %v3102_v49 }
 0x25e   :  { %v4418_v55 = vsel %vm3257_vm9, 4294967295, %v4417_v55  ;;  %2145 = vmatmul.msk.bf16.vlgmr.msrb.gmra.mxu3 %vm3257_vm9, %v4315_v54  ;;  %v347_v54 = vsel %vm4340_vm3, 1.0, %v2599_v47  ;;  %vm4335_vm13 = vcmp.eq.s32.totalorder %v3241_v14, %v3102_v49  ;;  %vm4343_vm3 = vcmp.eq.s32.totalorder %v123_v40, %v3102_v49 }
 0x25f   :  { %v3083_v45 = vpop.f32.mrf.mxu2  ;;  %434 = vadd.xlane.f32.xlu1 %v433_v6  ;;  %4419 = vst [vmem:[#allocation21_spill] sm:$0xff] %v4418_v55  ;;  %vm4320_vm0 = vcmp.eq.s32.totalorder %v3262_v56, %v3100_v32  ;;  %vm4326_vm7 = vcmp.eq.s32.totalorder %v3262_v56, %v3102_v49  ;;  %v394_v23 = vadd.f32 %v347_v54, %v346_v29  ;;  %v3307_v54 = vadd.s32 120, %v3092_v39 }
 0x260   :  { %v374_v10 = vsel %vm4320_vm0, 1.0, %v2599_v47  ;;  %v375_v28 = vsel %vm4326_vm7, 1.0, %v2599_v47 }
 0x261   :  { %v436_v55 = vadd.f32 %v375_v28, %v374_v10  ;;  %vm4336_vm7 = vcmp.eq.s32.totalorder %v3307_v54, %v3100_v32 }
 0x264   :  { %428 = vadd.xlane.f32.xlu2 %v427_v59  ;;  %v3265_v59 = vadd.s32 96, %v3092_v39 }
 0x266   :  { %vm4327_vm0 = vcmp.eq.s32.totalorder %v3265_v59, %v3100_v32  ;;  %vm4328_vm9 = vcmp.eq.s32.totalorder %v3265_v59, %v3102_v49 }
 0x267   :  { %v3085_v46 = vpop.f32.mrf.mxu2  ;;  %v370_v11 = vsel %vm4327_vm0, 1.0, %v2599_v47  ;;  %v371_v0 = vsel %vm4328_vm9, 1.0, %v2599_v47  ;;  %395 = vadd.xlane.f32.xlu1 %v394_v23  ;;  %vm4339_vm0 = vcmp.eq.s32.totalorder %v3307_v54, %v3102_v49  ;;  %vm4420_vm9 = vcmp.eq.s32.totalorder %v3241_v14, %v3100_v32 }
 0x268   :  { %v430_v10 = vadd.f32 %v371_v0, %v370_v11  ;;  %v348_v23 = vsel %vm4420_vm9, 1.0, %v2599_v47  ;;  %v349_v0 = vsel %vm4335_vm13, 1.0, %v2599_v47  ;;  %v376_v11 = vsel %vm4336_vm7, 1.0, %v2599_v47 }
 0x269   :  { %vm318_vm9 = vcmp.eq.s32.totalorder %v122_v52, %v3100_v32  ;;  %vm320_vm13 = vcmp.eq.s32.totalorder %v123_v40, %v3100_v32  ;;  %vm4341_vm7 = vcmp.eq.s32.totalorder %v122_v52, %v3102_v49 }
 0x26a   :  { %431 = vadd.xlane.f32.xlu0 %v430_v10  ;;  %v397_v10 = vadd.f32 %v349_v0, %v348_v23  ;;  %v350_v23 = vsel %vm318_vm9, 1.0, %v2599_v47  ;;  %v351_v0 = vsel %vm4341_vm7, 1.0, %v2599_v47  ;;  %vm4426_vm7 = vcmp.eq.s32.totalorder %v3157_v31, %v3100_v32 }
 0x26c   :  { %437 = vadd.xlane.f32.xlu2 %v436_v55  ;;  %v377_v55 = vsel %vm4339_vm0, 1.0, %v2599_v47  ;;  %vm3338_vm0 = vmpackc.low %vm320_vm13, %vm318_vm9  ;;  %vm4425_vm9 = vcmp.eq.s32.totalorder %v3098_v24, %v3100_v32 }
 0x26d   :  { %v439_v44 = vadd.f32 %v377_v55, %v376_v11 }
 0x26f   :  { %v3087_v48 = vpop.f32.mrf.mxu2 }
 0x272   :  { %440 = vadd.xlane.f32.xlu0 %v439_v44  ;;  %v353_v44 = vsel %vm4343_vm3, 1.0, %v2599_v47  ;;  %vm4431_vm3 = vcmp.eq.s32.totalorder %v3157_v31, %v3102_v49 }
 0x274   :  { %398 = vadd.xlane.f32.xlu2 %v397_v10  ;;  %v2406_v10 = vld [vmem:[%s4280_s5 + $0x74] sm:$0xf] }
 0x277   :  { %v3089_v38 = vpop.f32.mrf.mxu2 }
 0x278   :  { %v1049_v11 = vpack.c.bf16 %v3089_v38, %v3087_v48  ;;  %v4427_v48 = vmov 0  ;;  %v1046_v38 = vpack.c.bf16 %v3077_v42, %v3072_v41  ;;  %v4452_v41 = vmov 0 }
 0x27f   :  { %v3108_v51 = vpop.f32.mrf.mxu2 }
 0x287   :  { %v3132_v5 = vpop.f32.mrf.mxu2 }
 0x28f   :  { %v3167_v35 = vpop.f32.mrf.mxu2 }
 0x297   :  { %v3214_v37 = vpop.f32.mrf.mxu2 }
 0x298   :  { %v1051_v34 = vpack.c.bf16 %v3214_v37, %v3167_v35  ;;  %v1050_v35 = vpack.c.bf16 %v3132_v5, %v3108_v51  ;;  %v400_v37 = vadd.f32 %v351_v0, %v350_v23  ;;  %v1048_v51 = vpack.c.bf16 %v3085_v46, %v3083_v45  ;;  %v2236_v23 = vld [vmem:[%s4280_s5 + $0x78] sm:$0xf0] }
 0x299   :  { %v4432_v45 = vmov 0  ;;  %v1047_v46 = vpack.c.bf16 %v3081_v43, %v3079_v33  ;;  %v4437_v33 = vmov 0  ;;  %v4467_v43 = vmov 0 }
 0x29a   :  { %401 = vadd.xlane.f32.xlu0 %v400_v37  ;;  %v2226_v37 = vld [vmem:[%s4280_s5 + $0x60] sm:$0xf] }
 0x29f   :  { %v1032_v6 = vpop.f32.mrf.mxu2 }
 0x2a7   :  { %v1034_v28 = vpop.f32.mrf.mxu2 }
 0x2a8   :  { %v1052_v29 = vpack.c.bf16 %v1034_v28, %v1032_v6  ;;  %v4421_v6 = vmov 0  ;;  %v4424_v28 = vmov 1.0|1.0  }
 0x2a9   :  { %v4422_v6 = vsel %vm3338_vm0, 4294967295, %v4421_v6  ;;  %2147 = vmatmul.msk.bf16.gmra.mxu3 %vm3338_vm0, %v4424_v28  ;;  %vm3368_vm0 = vmpackc.low %vm4426_vm7, %vm4425_vm9  ;;  %vm4436_vm7 = vcmp.eq.s32.totalorder %v3241_v14, %v3102_v49 }
 0x2aa   :  { %1102 = vmatpush.bf16.msra.mxu0 %v1052_v29  ;;  %4423 = vst [vmem:[#allocation22_spill] sm:$0xff] %v4422_v6  ;;  %v4428_v48 = vsel %vm3368_vm0, 4294967295, %v4427_v48  ;;  %v2234_v29 = vld [vmem:[%s4280_s5 + $0x70] sm:$0xf] }
 0x2ab   :  { %4429 = vst [vmem:[#allocation23_spill] sm:$0xff] %v4428_v48 }
 0x2ae   :  { %1103 = vmatpush.bf16.msra.mxu0 %v1051_v34  ;;  %v352_v34 = vsel %vm320_vm13, 1.0, %v2599_v47  ;;  %vm4430_vm13 = vcmp.eq.s32.totalorder %v3098_v24, %v3102_v49  ;;  %v1045_v24 = vpack.c.bf16 %v3070_v50, %v3068_v36  ;;  %v4442_v36 = vmov 0 }
 0x2af   :  { %v403_v5 = vadd.f32 %v353_v44, %v352_v34  ;;  %vm3378_vm12 = vmpackc.low %vm4431_vm3, %vm4430_vm13  ;;  %vm4435_vm3 = vcmp.eq.s32.totalorder %v3092_v39, %v3102_v49  ;;  %vm4440_vm13 = vcmp.eq.s32.totalorder %v3122_v1, %v3100_v32  ;;  %v4447_v50 = vmov 0  ;;  %v2404_v34 = vld [vmem:[%s4280_s5 + $0x64] sm:$0xf] }
 0x2b0   :  { %v4433_v45 = vsel %vm3378_vm12, 4294967295, %v4432_v45  ;;  %vm3397_vm9 = vmpackc.low %vm4436_vm7, %vm4435_vm3  ;;  %vm4445_vm3 = vcmp.eq.s32.totalorder %v122_v52, %v3102_v49  ;;  %vm4446_vm7 = vcmp.eq.s32.totalorder %v123_v40, %v3102_v49  ;;  %v4457_v40 = vmov 0 }
 0x2b1   :  { %404 = vadd.xlane.f32.xlu1 %v403_v5  ;;  %4434 = vst [vmem:[#allocation24_spill] sm:$0xff] %v4433_v45  ;;  %v4438_v33 = vsel %vm3397_vm9, 4294967295, %v4437_v33  ;;  %vm3421_vm15 = vmpackc.low %vm4446_vm7, %vm4445_vm3  ;;  %vm4455_vm3 = vcmp.eq.s32.totalorder %v3154_v30, %v3100_v32  ;;  %vm4456_vm7 = vcmp.eq.s32.totalorder %v3198_v15, %v3100_v32  ;;  %v4462_v52 = vmov 0 }
 0x2b2   :  { %1104 = vmatpush.bf16.msra.mxu0 %v1050_v35  ;;  %4439 = vst [vmem:[#allocation25_spill] sm:$0xff] %v4438_v33  ;;  %v4448_v50 = vsel %vm3421_vm15, 4294967295, %v4447_v50  ;;  %v4472_v47 = vmov 0  ;;  %v2239_v35 = vor.u32 %v2406_v10, %v2236_v23 }
 0x2b3   :  { %4449 = vst [vmem:[#allocation27_spill] sm:$0xff] %v4448_v50 }
 0x2b4   :  { %1372 = vmatpush.bf16.msra.mxu3 %v2239_v35 }
 0x2b6   :  { %1105 = vmatpush.bf16.msra.mxu0 %v1049_v11  ;;  %v2405_v11 = vld [vmem:[%s4280_s5 + $0x64] sm:$0xf0] }
 0x2b7   :  { %v2227_v44 = vor.u32 %v2405_v11, %v2226_v37  ;;  %v2210_v11 = vld [vmem:[%s4280_s5 + $0x40] sm:$0xf] }
 0x2b9   :  { %2149 = vmatmul.msk.bf16.gmra.mxu3 %vm3368_vm0, %v4424_v28  ;;  %vm4441_vm0 = vcmp.eq.s32.totalorder %v3119_v61, %v3100_v32 }
 0x2ba   :  { %1106 = vmatpush.bf16.msra.mxu0 %v1048_v51  ;;  %vm3410_vm4 = vmpackc.low %vm4441_vm0, %vm4440_vm13  ;;  %vm4450_vm0 = vcmp.eq.s32.totalorder %v3151_v25, %v3100_v32  ;;  %vm4451_vm13 = vcmp.eq.s32.totalorder %v3204_v20, %v3100_v32  ;;  %v2228_v51 = vld [vmem:[%s4280_s5 + $0x68] sm:$0xf0] }
 0x2bb   :  { %v4443_v36 = vsel %vm3410_vm4, 4294967295, %v4442_v36  ;;  %v2231_v5 = vor.u32 %v2404_v34, %v2228_v51  ;;  %v2401_v34 = vld [vmem:[%s4280_s5 + $0x44] sm:$0xf0]  ;;  %v4487_v51 = vmov 0 }
 0x2bc   :  { %4444 = vst [vmem:[#allocation26_spill] sm:$0xff] %v4443_v36 }
 0x2bd   :  { %1373 = vmatpush.bf16.msra.mxu3 %v2231_v5  ;;  %v2211_v5 = vor.u32 %v2401_v34, %v2210_v11  ;;  %v2204_v11 = vld [vmem:[%s4280_s5 + $0x38] sm:$0xf0] }
 0x2be   :  { %1107 = vmatpush.bf16.msra.mxu0 %v1047_v46  ;;  %v2218_v46 = vld [vmem:[%s4280_s5 + $0x50] sm:$0xf] }
 0x2bf   :  { %v3470_v42 = vpop.xlane.xlu2 %407 }
 0x2c0   :  { %v3720_v33 = vmax.f32 %v3470_v42, 1.0 }
 0x2c2   :  { %1108 = vmatpush.bf16.msra.mxu0 %v1046_v38  ;;  %v2403_v38 = vld [vmem:[%s4280_s5 + $0x54] sm:$0xf0] }
 0x2c3   :  { %v3514_v31 = vpop.xlane.xlu0 %410 }
 0x2c6   :  { %1109 = vmatpush.bf16.msra.mxu0 %v1045_v24  ;;  %v2402_v24 = vld [vmem:[%s4280_s5 + $0x54] sm:$0xf] }
 0x2c7   :  { %v3485_v39 = vpop.xlane.xlu2 %416 }
 0x2c9   :  { %2161 = vmatmul.msk.bf16.vlgmr.msra.gmra.mxu0 %vm3397_vm9, %v4424_v28  ;;  %2151 = vmatmul.msk.bf16.gmra.mxu3 %vm3410_vm4, %v4424_v28  ;;  %vm3434_vm9 = vmpackc.low %vm4451_vm13, %vm4450_vm0  ;;  %vm4460_vm0 = vcmp.eq.s32.totalorder %v3122_v1, %v3102_v49  ;;  %vm4461_vm13 = vcmp.eq.s32.totalorder %v3119_v61, %v3102_v49  ;;  %v3497_v61 = vpop.xlane.xlu1 %413  ;;  %v4477_v1 = vmov 0 }
 0x2ca   :  { %v4453_v41 = vsel %vm3434_vm9, 4294967295, %v4452_v41 }
 0x2cb   :  { %4454 = vst [vmem:[#allocation28_spill] sm:$0xff] %v4453_v41  ;;  %v3533_v55 = vpop.xlane.xlu0 %422 }
 0x2d9   :  { %2163 = vmatmul.msk.bf16.gmra.mxu0 %vm3421_vm15, %v4424_v28  ;;  %2153 = vmatmul.msk.bf16.gmra.mxu3 %vm3434_vm9, %v4424_v28  ;;  %vm3450_vm15 = vmpackc.low %vm4456_vm7, %vm4455_vm3  ;;  %vm4465_vm3 = vcmp.eq.s32.totalorder %v3265_v59, %v3100_v32  ;;  %vm4466_vm7 = vcmp.eq.s32.totalorder %v3201_v19, %v3100_v32 }
 0x2da   :  { %v4458_v40 = vsel %vm3450_vm15, 4294967295, %v4457_v40 }
 0x2db   :  { %4459 = vst [vmem:[#allocation29_spill] sm:$0xff] %v4458_v40 }
 0x2dd   :  { %v3580_v23 = vpop.xlane.xlu0 %431 }
 0x2e9   :  { %2165 = vmatmul.msk.bf16.gmra.mxu0 %vm3378_vm12, %v4424_v28  ;;  %2155 = vmatmul.msk.bf16.gmra.mxu3 %vm3450_vm15, %v4424_v28  ;;  %vm3463_vm12 = vmpackc.low %vm4461_vm13, %vm4460_vm0  ;;  %vm4470_vm0 = vcmp.eq.s32.totalorder %v3151_v25, %v3102_v49  ;;  %vm4471_vm13 = vcmp.eq.s32.totalorder %v3204_v20, %v3102_v49  ;;  %v3512_v25 = vpop.xlane.xlu2 %419  ;;  %v3519_v20 = vpop.xlane.xlu1 %425 }
 0x2ea   :  { %v4463_v52 = vsel %vm3463_vm12, 4294967295, %v4462_v52  ;;  %vm3478_vm15 = vmpackc.low %vm4466_vm7, %vm4465_vm3  ;;  %vm4475_vm3 = vcmp.eq.s32.totalorder %v3262_v56, %v3100_v32  ;;  %vm4476_vm7 = vcmp.eq.s32.totalorder %v3307_v54, %v3100_v32  ;;  %v4482_v32 = vmov 0 }
 0x2eb   :  { %4464 = vst [vmem:[#allocation30_spill] sm:$0xff] %v4463_v52  ;;  %v4468_v43 = vsel %vm3478_vm15, 4294967295, %v4467_v43  ;;  %v2178_v52 = vld [vmem:[%s4280_s5] sm:$0xf] }
 0x2ec   :  { %4469 = vst [vmem:[#allocation31_spill] sm:$0xff] %v4468_v43 }
 0x2f1   :  { %v3531_v14 = vpop.xlane.xlu2 %428  ;;  %v3550_v0 = vpop.xlane.xlu1 %434 }
 0x2f9   :  { %2167 = vmatmul.msk.bf16.gmra.mxu0 %vm3463_vm12, %v4424_v28  ;;  %2157 = vmatmul.msk.bf16.gmra.mxu3 %vm3478_vm15, %v4424_v28  ;;  %vm3493_vm12 = vmpackc.low %vm4471_vm13, %vm4470_vm0  ;;  %vm4480_vm0 = vcmp.eq.s32.totalorder %v3154_v30, %v3102_v49  ;;  %vm4481_vm13 = vcmp.eq.s32.totalorder %v3198_v15, %v3102_v49  ;;  %v2407_v30 = vld [vmem:[%s4280_s5 + $0x74] sm:$0xf0]  ;;  %v3578_v10 = vpop.xlane.xlu2 %437  ;;  %v396_v37 = vpop.xlane.xlu1 %395 }
 0x2fa   :  { %v4473_v47 = vsel %vm3493_vm12, 4294967295, %v4472_v47  ;;  %vm3508_vm15 = vmpackc.low %vm4476_vm7, %vm4475_vm3  ;;  %v2235_v15 = vor.u32 %v2407_v30, %v2234_v29  ;;  %v2220_v29 = vld [vmem:[%s4280_s5 + $0x58] sm:$0xf0]  ;;  %v3576_v30 = vpop.f32.mrf.mxu0  ;;  %vm4485_vm7 = vcmp.eq.s32.totalorder %v3265_v59, %v3102_v49  ;;  %v2399_v59 = vld [vmem:[%s4280_s5 + $0x34] sm:$0xf0] }
 0x2fb   :  { %4474 = vst [vmem:[#allocation32_spill] sm:$0xff] %v4473_v47  ;;  %v4478_v1 = vsel %vm3508_vm15, 4294967295, %v4477_v1  ;;  %vm3527_vm3 = vmpackc.low %vm4481_vm13, %vm4480_vm0  ;;  %v2223_v35 = vor.u32 %v2402_v24, %v2220_v29  ;;  %vm4486_vm0 = vcmp.eq.s32.totalorder %v3201_v19, %v3102_v49  ;;  %v3604_v24 = vmax.f32 %v396_v37, 1.0  ;;  %v3606_v29 = vpop.f32.mrf.mxu3  ;;  %v2202_v19 = vld [vmem:[%s4280_s5 + $0x30] sm:$0xf] }
 0x2fc   :  { %4479 = vst [vmem:[#allocation33_spill] sm:$0xff] %v4478_v1  ;;  %v4483_v32 = vsel %vm3527_vm3, 4294967295, %v4482_v32  ;;  %1323 = vmatpush.bf16.msrb.mxu0 %v2235_v15  ;;  %2432 = vmatpush.bf16.msra.mxu1 %v2235_v15  ;;  %v2219_v15 = vor.u32 %v2403_v38, %v2218_v46  ;;  %vm3597_vm13 = vmpackc.low %vm4486_vm0, %vm4485_vm7  ;;  %v2212_v46 = vld [vmem:[%s4280_s5 + $0x48] sm:$0xf0]  ;;  %v2398_v37 = vld [vmem:[%s4280_s5 + $0x34] sm:$0xf]  ;;  %vm4490_vm7 = vcmp.eq.s32.totalorder %v3262_v56, %v3102_v49 }
 0x2fd   :  { %4484 = vst [vmem:[#allocation34_spill] sm:$0xff] %v4483_v32  ;;  %1374 = vmatpush.bf16.msra.mxu3 %v2223_v35  ;;  %v4488_v51 = vsel %vm3597_vm13, 4294967295, %v4487_v51  ;;  %v2203_v35 = vor.u32 %v2399_v59, %v2202_v19  ;;  %2457 = vrcp.f32 %v3604_v24  ;;  %vm4491_vm0 = vcmp.eq.s32.totalorder %v3307_v54, %v3102_v49 }
 0x2fe   :  { %4489 = vst [vmem:[#allocation35_spill] sm:$0xff] %v4488_v51 }
 0x300   :  { %1324 = vmatpush.bf16.msrb.mxu0 %v2227_v44  ;;  %2433 = vmatpush.bf16.msra.mxu1 %v2227_v44  ;;  %v2400_v44 = vld [vmem:[%s4280_s5 + $0x44] sm:$0xf] }
 0x301   :  { %v2215_v38 = vor.u32 %v2400_v44, %v2212_v46  ;;  %v399_v34 = vpop.xlane.xlu2 %398  ;;  %v3625_v44 = vpop.xlane.xlu0 %440  ;;  %v2194_v46 = vld [vmem:[%s4280_s5 + $0x20] sm:$0xf] }
 0x302   :  { %v3634_v19 = vmax.f32 %v399_v34, 1.0  ;;  %v2395_v34 = vld [vmem:[%s4280_s5 + $0x14] sm:$0xf0] }
 0x303   :  { %1375 = vmatpush.bf16.msra.mxu3 %v2215_v38  ;;  %v2397_v38 = vld [vmem:[%s4280_s5 + $0x24] sm:$0xf0]  ;;  %v3652_v51 = vpop.f32.mrf.mxu3 }
 0x304   :  { %1325 = vmatpush.bf16.msrb.mxu0 %v2219_v15  ;;  %2434 = vmatpush.bf16.msra.mxu1 %v2219_v15  ;;  %v3617_v15 = vpop.f32.mrf.mxu0  ;;  %v2195_v59 = vor.u32 %v2397_v38, %v2194_v46  ;;  %v2394_v46 = vld [vmem:[%s4280_s5 + $0x14] sm:$0xf]  ;;  %v2458_v38 = vpop.eup %2457  ;;  %2459 = vrcp.f32 %v3634_v19 }
 0x305   :  { %v459_v32 = vmul.f32 %v2458_v38, %v3604_v24 }
 0x307   :  { %v460_v49 = vsub.f32 1.0, %v459_v32  ;;  %v467_v32 = vand.u32 2147483647, %v3604_v24 }
 0x308   :  { %1326 = vmatpush.bf16.msrb.mxu0 %v2211_v5  ;;  %2435 = vmatpush.bf16.msra.mxu1 %v2211_v5  ;;  %v2207_v5 = vor.u32 %v2398_v37, %v2204_v11  ;;  %v2396_v37 = vld [vmem:[%s4280_s5 + $0x24] sm:$0xf] }
 0x309   :  { %2169 = vmatmul.msk.bf16.gmra.mxu0 %vm3493_vm12, %v4424_v28  ;;  %2159 = vmatmul.msk.bf16.gmra.mxu3 %vm3508_vm15, %v4424_v28  ;;  %vm478_vm12 = vweird.f32 %v3634_v19 }
 0x30a   :  { %1376 = vmatpush.bf16.msra.mxu3 %v2207_v5  ;;  %v2186_v5 = vld [vmem:[%s4280_s5 + $0x10] sm:$0xf]  ;;  %v2460_v45 = vpop.eup %2459 }
 0x30b   :  { %v474_v56 = vmul.f32 %v2460_v45, %v3634_v19  ;;  %vm479_vm15 = vweird.f32 %v2460_v45 }
 0x30c   :  { %1327 = vmatpush.bf16.msrb.mxu0 %v2203_v35  ;;  %2436 = vmatpush.bf16.msra.mxu1 %v2203_v35  ;;  %v2196_v35 = vld [vmem:[%s4280_s5 + $0x28] sm:$0xf0] }
 0x30d   :  { %v2199_v11 = vor.u32 %v2396_v37, %v2196_v35  ;;  %v2187_v37 = vor.u32 %v2395_v34, %v2186_v5  ;;  %v402_v47 = vpop.xlane.xlu0 %401  ;;  %v2393_v5 = vld [vmem:[%s4280_s5 + $0x4] sm:$0xf0]  ;;  %v4492_v34 = vmov 0 }
 0x30e   :  { %v3682_v50 = vmax.f32 %v402_v47, 1.0 }
 0x30f   :  { %1377 = vmatpush.bf16.msra.mxu3 %v2199_v11  ;;  %v3657_v11 = vpop.f32.mrf.mxu0 }
 0x310   :  { %1328 = vmatpush.bf16.msrb.mxu0 %v2195_v59  ;;  %2437 = vmatpush.bf16.msra.mxu1 %v2195_v59  ;;  %v2188_v59 = vld [vmem:[%s4280_s5 + $0x18] sm:$0xf0]  ;;  %2461 = vrcp.f32 %v3682_v50 }
 0x311   :  { %v2191_v35 = vor.u32 %v2394_v46, %v2188_v59  ;;  %v2179_v46 = vor.u32 %v2393_v5, %v2178_v52  ;;  %v2180_v59 = vld [vmem:[%s4280_s5 + $0x8] sm:$0xf0]  ;;  %v461_v5 = vmul.f32 %v2458_v38, %v460_v49 }
 0x313   :  { %1378 = vmatpush.bf16.msra.mxu3 %v2191_v35 }
 0x314   :  { %1329 = vmatpush.bf16.msrb.mxu0 %v2187_v37  ;;  %2438 = vmatpush.bf16.msra.mxu1 %v2187_v37  ;;  %v2392_v37 = vld [vmem:[%s4280_s5 + $0x4] sm:$0xf] }
 0x315   :  { %v2183_v35 = vor.u32 %v2392_v37, %v2180_v59  ;;  %v475_v59 = vsub.f32 1.0, %v474_v56 }
 0x317   :  { %1379 = vmatpush.bf16.msra.mxu3 %v2183_v35  ;;  %v3691_v37 = vpop.f32.mrf.mxu0  ;;  %v462_v35 = vadd.f32 %v2458_v38, %v461_v5  ;;  %v476_v49 = vmul.f32 %v2460_v45, %v475_v59  ;;  %v484_v5 = vand.u32 2147483648, %v3634_v19  ;;  %v482_v59 = vand.u32 2147483647, %v3634_v19 }
 0x318   :  { %1330 = vmatpush.bf16.msrb.mxu0 %v2179_v46  ;;  %2439 = vmatpush.bf16.msra.mxu1 %v2179_v46  ;;  %v469_v46 = vand.u32 2147483648, %v3604_v24 }
 0x319   :  { %2171 = vmatmul.msk.bf16.gmra.mxu0 %vm3527_vm3, %v4424_v28  ;;  %vm468_vm3 = vcmp.eq.f32.partialorder %v467_v32, 8.507059e+37  ;;  %v477_v41 = vadd.f32 %v2460_v45, %v476_v49 }
 0x324   :  { %v405_v54 = vpop.xlane.xlu1 %404 }
 0x325   :  { %v3693_v47 = vmax.f32 %v405_v54, 1.0  ;;  %v470_v54 = vor.u32 1.1754944e-38, %v469_v46 }
 0x327   :  { %2463 = vrcp.f32 %v3693_v47 }
 0x328   :  { %2465 = vrcp.f32 %v3720_v33 }
 0x329   :  { %2173 = vmatmul.msk.bf16.gmra.mxu0 %vm3597_vm13, %v4424_v28  ;;  %vm3672_vm13 = vmpackc.low %vm4491_vm0, %vm4490_vm7  ;;  %vm463_vm7 = vweird.f32 %v3604_v24  ;;  %vm464_vm0 = vweird.f32 %v2458_v38 }
 0x32a   :  { %v4493_v34 = vsel %vm3672_vm13, 4294967295, %v4492_v34 }
 0x32b   :  { %4494 = vst [vmem:[#allocation36_spill] sm:$0xff] %v4493_v34  ;;  %v3698_v34 = vpop.eup %2461 }
 0x32c   :  { %v3689_v52 = vpop.f32.mrf.mxu3  ;;  %v489_v56 = vmul.f32 %v3698_v34, %v3682_v50 }
 0x32d   :  { %v3715_v32 = vpop.eup %2463 }
 0x32e   :  { %v504_v48 = vmul.f32 %v3715_v32, %v3693_v47 }
 0x330   :  { %v505_v49 = vsub.f32 1.0, %v504_v48  ;;  %v3751_v48 = vpop.eup %2465 }
 0x334   :  { %v3711_v43 = vpop.f32.mrf.mxu3 }
 0x339   :  { %2175 = vmatmul.msk.bf16.gmra.mxu0 %vm3672_vm13, %v4424_v28  ;;  %vm3700_vm13 = vmor %vm463_vm7, %vm464_vm0 }
 0x33a   :  { %v466_v1 = vsel %vm3700_vm13, %v2458_v38, %v462_v35  ;;  %vm480_vm7 = vmor %vm478_vm12, %vm479_vm15  ;;  %v490_v38 = vsub.f32 1.0, %v489_v56  ;;  %v485_v35 = vor.u32 1.1754944e-38, %v484_v5  ;;  %vm483_vm13 = vcmp.eq.f32.partialorder %v482_v59, 8.507059e+37 }
 0x33b   :  { %v3717_v46 = vsel %vm468_vm3, %v470_v54, %v466_v1  ;;  %v481_v6 = vsel %vm480_vm7, %v2460_v45, %v477_v41  ;;  %vm493_vm15 = vweird.f32 %v3682_v50  ;;  %vm494_vm12 = vweird.f32 %v3698_v34 }
 0x33c   :  { %v3727_v19 = vsel %vm483_vm13, %v485_v35, %v481_v6  ;;  %v3739_v41 = vmax.f32 %v3514_v31, 1.0  ;;  %v497_v6 = vand.u32 2147483647, %v3682_v50  ;;  %v499_v54 = vand.u32 2147483648, %v3682_v50  ;;  %v3743_v56 = vpop.f32.mrf.mxu3  ;;  %vm3747_vm3 = vmor %vm493_vm15, %vm494_vm12 }
 0x33d   :  { %4497 = vst [vmem:[#allocation37_spill] sm:$0xff] %v3727_v19  ;;  %v506_v5 = vmul.f32 %v3715_v32, %v505_v49  ;;  %vm508_vm7 = vweird.f32 %v3693_v47  ;;  %vm509_vm13 = vweird.f32 %v3715_v32  ;;  %v519_v35 = vmul.f32 %v3751_v48, %v3720_v33 }
 0x33e   :  { %2467 = vrcp.f32 %v3739_v41  ;;  %vm498_vm0 = vcmp.eq.f32.partialorder %v497_v6, 8.507059e+37  ;;  %v500_v50 = vor.u32 1.1754944e-38, %v499_v54  ;;  %vm510_vm15 = vmor %vm508_vm7, %vm509_vm13  ;;  %vm538_vm13 = vweird.f32 %v3739_v41 }
 0x33f   :  { %v507_v6 = vadd.f32 %v3715_v32, %v506_v5 }
 0x346   :  { %v1111_v24 = vpop.f32.mrf.mxu0 }
 0x347   :  { %v1112_v40 = vadd.f32 %v1111_v24, %v3606_v29  ;;  %v491_v29 = vmul.f32 %v3698_v34, %v490_v38  ;;  %v520_v24 = vsub.f32 1.0, %v519_v35  ;;  %v3787_v35 = vmax.f32 %v3485_v39, 1.0 }
 0x348   :  { %v527_v39 = vand.u32 2147483647, %v3720_v33 }
 0x349   :  { %v1151_v36 = vmul.f32 %v1112_v40, %v3717_v46  ;;  %v3734_v40 = vld [vmem:[%s4279_s4] ss:$0 sm:$0xff] }
 0x34b   :  { %v1167_v42 = vadd.f32 %v1151_v36, %v3576_v30  ;;  %v492_v30 = vadd.f32 %v3698_v34, %v491_v29  ;;  %v512_v29 = vand.u32 2147483647, %v3693_v47 }
 0x34d   :  { %v496_v38 = vsel %vm3747_vm3, %v3698_v34, %v492_v30  ;;  %v3770_v34 = vmax.f32 %v3497_v61, 1.0  ;;  %v3774_v30 = vpop.eup %2467  ;;  %vm513_vm12 = vcmp.eq.f32.partialorder %v512_v29, 8.507059e+37  ;;  %vm523_vm3 = vweird.f32 %v3720_v33 }
 0x34e   :  { %v1113_v1 = vpop.f32.mrf.mxu0  ;;  %v3772_v54 = vsel %vm498_vm0, %v500_v50, %v496_v38  ;;  %v534_v61 = vmul.f32 %v3774_v30, %v3739_v41  ;;  %v521_v50 = vmul.f32 %v3751_v48, %v520_v24  ;;  %vm524_vm0 = vweird.f32 %v3751_v48 }
 0x34f   :  { %v1114_v45 = vadd.f32 %v1113_v1, %v3652_v51  ;;  %v1187_v51 = vadd.f32 %v3734_v40, %v1167_v42  ;;  %v514_v1 = vand.u32 2147483648, %v3693_v47  ;;  %2469 = vrcp.f32 %v3770_v34  ;;  %vm3797_vm7 = vmor %vm523_vm3, %vm524_vm0 }
 0x350   :  { %2471 = vrcp.f32 %v3787_v35 }
 0x351   :  { %v1152_v36 = vmul.f32 %v1114_v45, %v3727_v19  ;;  %v1203_v42 = vmax.f32 %v1187_v51, 0.0  ;;  %v1074_v19 = vpop.f32.mrf.mxu3 }
 0x353   :  { %v1168_v31 = vadd.f32 %v1152_v36, %v3617_v15 }
 0x355   :  { %v1188_v59 = vadd.f32 %v3734_v40, %v1168_v31  ;;  %v515_v31 = vor.u32 1.1754944e-38, %v514_v1  ;;  %v3792_v29 = vpop.eup %2469  ;;  %v522_v1 = vadd.f32 %v3751_v48, %v521_v50  ;;  %v544_v50 = vand.u32 2147483648, %v3739_v41 }
 0x356   :  { %v1116_v15 = vpop.f32.mrf.mxu0 }
 0x357   :  { %v1204_v49 = vmax.f32 %v1188_v59, 0.0  ;;  %v1117_v45 = vadd.f32 %v1116_v15, %v3689_v52  ;;  %v511_v52 = vsel %vm510_vm15, %v3715_v32, %v507_v6  ;;  %v535_v32 = vsub.f32 1.0, %v534_v61 }
 0x358   :  { %v3781_v51 = vsel %vm513_vm12, %v515_v31, %v511_v52  ;;  %v549_v6 = vmul.f32 %v3792_v29, %v3770_v34  ;;  %vm539_vm15 = vweird.f32 %v3774_v30  ;;  %vm528_vm12 = vcmp.eq.f32.partialorder %v527_v39, 8.507059e+37 }
 0x359   :  { %v1219_v36 = vpack.c.bf16 %v1204_v49, %v1203_v42  ;;  %v1153_v47 = vmul.f32 %v1117_v45, %v3772_v54  ;;  %v529_v42 = vand.u32 2147483648, %v3720_v33  ;;  %v1077_v45 = vpop.f32.mrf.mxu3  ;;  %v536_v24 = vmul.f32 %v3774_v30, %v535_v32  ;;  %v3820_v32 = vpop.eup %2471  ;;  %vm3824_vm3 = vmor %vm538_vm13, %vm539_vm15 }
 0x35a   :  { %vm554_vm13 = vweird.f32 %v3792_v29 }
 0x35b   :  { %1331 = vmatmul.bf16.vlgmr.msrb.gmra.mxu0 %v1219_v36  ;;  %1380 = vmatmul.bf16.vlgmr.msra.gmra.mxu3 %v1219_v36  ;;  %v1169_v59 = vadd.f32 %v1153_v47, %v3657_v11  ;;  %v530_v31 = vor.u32 1.1754944e-38, %v529_v42 }
 0x35d   :  { %v1189_v49 = vadd.f32 %v3734_v40, %v1169_v59 }
 0x35e   :  { %v1118_v5 = vpop.f32.mrf.mxu0 }
 0x35f   :  { %v1119_v38 = vadd.f32 %v1118_v5, %v3711_v43  ;;  %v1205_v52 = vmax.f32 %v1189_v49, 0.0  ;;  %v3815_v5 = vmax.f32 %v3512_v25, 1.0  ;;  %v545_v25 = vor.u32 1.1754944e-38, %v544_v50 }
 0x361   :  { %v1154_v15 = vmul.f32 %v1119_v38, %v3781_v51  ;;  %v537_v38 = vadd.f32 %v3774_v30, %v536_v24  ;;  %2473 = vrcp.f32 %v3815_v5  ;;  %v1079_v39 = vpop.f32.mrf.mxu3  ;;  %v3838_v24 = vmax.f32 %v3533_v55, 1.0 }
 0x363   :  { %v1170_v11 = vadd.f32 %v1154_v15, %v3691_v37  ;;  %v526_v37 = vsel %vm3797_vm7, %v3751_v48, %v522_v1  ;;  %v542_v48 = vand.u32 2147483647, %v3739_v41  ;;  %v550_v15 = vsub.f32 1.0, %v549_v6 }
 0x364   :  { %v3822_v1 = vsel %vm528_vm12, %v530_v31, %v526_v37  ;;  %v541_v41 = vsel %vm3824_vm3, %v3774_v30, %v537_v38  ;;  %vm553_vm7 = vweird.f32 %v3770_v34  ;;  %2475 = vrcp.f32 %v3838_v24 }
 0x365   :  { %v1190_v36 = vadd.f32 %v3734_v40, %v1170_v11  ;;  %v564_v11 = vmul.f32 %v3820_v32, %v3787_v35  ;;  %vm543_vm0 = vcmp.eq.f32.partialorder %v542_v48, 8.507059e+37  ;;  %v551_v49 = vmul.f32 %v3792_v29, %v550_v15  ;;  %vm3851_vm15 = vmor %vm553_vm7, %vm554_vm13 }
 0x366   :  { %v1121_v47 = vpop.f32.mrf.mxu0  ;;  %v3840_v37 = vsel %vm543_vm0, %v545_v25, %v541_v41  ;;  %vm568_vm3 = vweird.f32 %v3787_v35  ;;  %vm569_vm0 = vweird.f32 %v3820_v32 }
 0x367   :  { %v1122_v33 = vadd.f32 %v1121_v47, %v3743_v56  ;;  %v1206_v61 = vmax.f32 %v1190_v36, 0.0  ;;  %v565_v31 = vsub.f32 1.0, %v564_v11  ;;  %v3845_v47 = vpop.eup %2473  ;;  %v3871_v11 = vmax.f32 %v3519_v20, 1.0  ;;  %vm570_vm7 = vmor %vm568_vm3, %vm569_vm0 }
 0x368   :  { %v579_v50 = vmul.f32 %v3845_v47, %v3815_v5 }
 0x369   :  { %v1220_v59 = vpack.c.bf16 %v1206_v61, %v1205_v52  ;;  %v1155_v56 = vmul.f32 %v1122_v33, %v3822_v1  ;;  %v552_v33 = vadd.f32 %v3792_v29, %v551_v49  ;;  %v557_v52 = vand.u32 2147483647, %v3770_v34  ;;  %v1082_v41 = vpop.f32.mrf.mxu3 }
 0x36a   :  { %v566_v38 = vmul.f32 %v3820_v32, %v565_v31  ;;  %v580_v31 = vsub.f32 1.0, %v579_v50  ;;  %2477 = vrcp.f32 %v3871_v11 }
 0x36b   :  { %1336 = vmatmul.bf16.gmra.mxu0 %v1220_v59  ;;  %1385 = vmatmul.bf16.gmra.mxu3 %v1220_v59  ;;  %v1171_v6 = vadd.f32 %v1155_v56, %v2899_v57  ;;  %v559_v57 = vand.u32 2147483648, %v3770_v34  ;;  %v556_v34 = vsel %vm3851_vm15, %v3792_v29, %v552_v33  ;;  %vm3864_vm12 = vcmp.eq.f32.partialorder %v557_v52, 8.507059e+37 }
 0x36c   :  { %v567_v49 = vadd.f32 %v3820_v32, %v566_v38  ;;  %vm583_vm15 = vweird.f32 %v3815_v5 }
 0x36d   :  { %v1191_v61 = vadd.f32 %v3734_v40, %v1171_v6  ;;  %v560_v48 = vor.u32 1.1754944e-38, %v559_v57  ;;  %v572_v6 = vand.u32 2147483647, %v3787_v35  ;;  %v581_v57 = vmul.f32 %v3845_v47, %v580_v31 }
 0x36e   :  { %v1123_v43 = vpop.f32.mrf.mxu0  ;;  %v3919_v31 = vmax.f32 %v3580_v23, 1.0 }
 0x36f   :  { %v1124_v36 = vadd.f32 %v1123_v43, %v1074_v19  ;;  %v1207_v56 = vmax.f32 %v1191_v61, 0.0  ;;  %v574_v43 = vand.u32 2147483648, %v3787_v35  ;;  %v571_v35 = vsel %vm570_vm7, %v3820_v32, %v567_v49 }
 0x370   :  { %vm573_vm13 = vcmp.eq.f32.partialorder %v572_v6, 8.507059e+37  ;;  %v3890_v61 = vmax.f32 %v3531_v14, 1.0  ;;  %vm598_vm7 = vweird.f32 %v3838_v24 }
 0x371   :  { %v1156_v30 = vmul.f32 %v1124_v36, %v3840_v37  ;;  %v3876_v36 = vpop.eup %2475  ;;  %v575_v20 = vor.u32 1.1754944e-38, %v574_v43 }
 0x372   :  { %v594_v33 = vmul.f32 %v3876_v36, %v3838_v24  ;;  %v3897_v32 = vpop.eup %2477  ;;  %2479 = vrcp.f32 %v3890_v61 }
 0x373   :  { %v1172_v55 = vadd.f32 %v1156_v30, %v2908_v60  ;;  %v3892_v50 = vsel %vm573_vm13, %v575_v20, %v571_v35  ;;  %v582_v60 = vadd.f32 %v3845_v47, %v581_v57  ;;  %vm599_vm13 = vweird.f32 %v3876_v36 }
 0x374   :  { %2481 = vrcp.f32 %v3919_v31 }
 0x375   :  { %v1192_v59 = vadd.f32 %v3734_v40, %v1172_v55 }
 0x376   :  { %v1126_v15 = vpop.f32.mrf.mxu0 }
 0x377   :  { %v1127_v42 = vadd.f32 %v1126_v15, %v1077_v45  ;;  %v1208_v25 = vmax.f32 %v1192_v59, 0.0  ;;  %v3880_v45 = vsel %vm3864_vm12, %v560_v48, %v556_v34  ;;  %vm584_vm12 = vweird.f32 %v3845_v47  ;;  %v1084_v34 = vpop.f32.mrf.mxu3 }
 0x378   :  { %v595_v59 = vsub.f32 1.0, %v594_v33  ;;  %vm3903_vm3 = vmor %vm583_vm15, %vm584_vm12  ;;  %v3924_v35 = vpop.eup %2479 }
 0x379   :  { %v1221_v29 = vpack.c.bf16 %v1208_v25, %v1207_v56  ;;  %v1157_v30 = vmul.f32 %v1127_v42, %v3880_v45  ;;  %v609_v42 = vmul.f32 %v3897_v32, %v3871_v11  ;;  %vm3928_vm15 = vmor %vm598_vm7, %vm599_vm13 }
 0x37a   :  { %v596_v25 = vmul.f32 %v3876_v36, %v595_v59 }
 0x37b   :  { %1341 = vmatmul.bf16.vlgmr.msra.gmra.mxu1 %v1221_v29  ;;  %1390 = vmatmul.bf16.gmra.mxu3 %v1221_v29  ;;  %v1173_v55 = vadd.f32 %v1157_v30, %v2919_v63  ;;  %v587_v63 = vand.u32 2147483647, %v3815_v5  ;;  %v604_v30 = vand.u32 2147483648, %v3838_v24 }
 0x37c   :  { %v597_v33 = vadd.f32 %v3876_v36, %v596_v25  ;;  %v617_v25 = vand.u32 2147483647, %v3871_v11 }
 0x37d   :  { %v1193_v15 = vadd.f32 %v3734_v40, %v1173_v55  ;;  %vm588_vm0 = vcmp.eq.f32.partialorder %v587_v63, 8.507059e+37 }
 0x37e   :  { %v1128_v52 = vpop.f32.mrf.mxu0  ;;  %v601_v59 = vsel %vm3928_vm15, %v3876_v36, %v597_v33  ;;  %v3949_v36 = vpop.eup %2481  ;;  %vm618_vm13 = vcmp.eq.f32.partialorder %v617_v25, 8.507059e+37  ;;  %vm628_vm15 = vweird.f32 %v3890_v61 }
 0x37f   :  { %v1129_v19 = vadd.f32 %v1128_v52, %v1079_v39  ;;  %v589_v39 = vand.u32 2147483648, %v3815_v5  ;;  %v586_v5 = vsel %vm3903_vm3, %v3845_v47, %v582_v60  ;;  %v1209_v49 = vmax.f32 %v1193_v15, 0.0  ;;  %v1087_v23 = vpop.f32.mrf.mxu3 }
 0x380   :  { %v602_v47 = vand.u32 2147483647, %v3838_v24  ;;  %v610_v52 = vsub.f32 1.0, %v609_v42  ;;  %v624_v24 = vmul.f32 %v3924_v35, %v3890_v61  ;;  %vm613_vm3 = vweird.f32 %v3871_v11 }
 0x381   :  { %v1158_v38 = vmul.f32 %v1129_v19, %v3892_v50  ;;  %v605_v19 = vor.u32 1.1754944e-38, %v604_v30 }
 0x382   :  { %vm603_vm12 = vcmp.eq.f32.partialorder %v602_v47, 8.507059e+37  ;;  %v611_v60 = vmul.f32 %v3897_v32, %v610_v52  ;;  %v625_v15 = vsub.f32 1.0, %v624_v24  ;;  %v3971_v47 = vmax.f32 %v3578_v10, 1.0 }
 0x383   :  { %v1174_v14 = vadd.f32 %v1158_v38, %v2921_v2  ;;  %v590_v2 = vor.u32 1.1754944e-38, %v589_v39  ;;  %v3944_v48 = vsel %vm603_vm12, %v605_v19, %v601_v59  ;;  %vm629_vm12 = vweird.f32 %v3924_v35 }
 0x384   :  { %v634_v52 = vand.u32 2147483648, %v3890_v61 }
 0x385   :  { %v1194_v56 = vadd.f32 %v3734_v40, %v1174_v14  ;;  %v3926_v57 = vsel %vm588_vm0, %v590_v2, %v586_v5  ;;  %v3942_v14 = vmax.f32 %v3550_v0, 1.0  ;;  %vm614_vm0 = vweird.f32 %v3897_v32 }
 0x386   :  { %v1131_v43 = vpop.f32.mrf.mxu0  ;;  %vm3955_vm7 = vmor %vm613_vm3, %vm614_vm0  ;;  %v639_v2 = vmul.f32 %v3949_v36, %v3919_v31  ;;  %v635_v10 = vor.u32 1.1754944e-38, %v634_v52 }
 0x387   :  { %v1132_v29 = vadd.f32 %v1131_v43, %v1082_v41  ;;  %v1210_v6 = vmax.f32 %v1194_v56, 0.0  ;;  %v612_v56 = vadd.f32 %v3897_v32, %v611_v60  ;;  %2483 = vrcp.f32 %v3942_v14  ;;  %vm3980_vm3 = vmor %vm628_vm15, %vm629_vm12 }
 0x388   :  { %v640_v24 = vsub.f32 1.0, %v639_v2  ;;  %2485 = vrcp.f32 %v3971_v47  ;;  %v649_v2 = vand.u32 2147483648, %v3919_v31  ;;  %v664_v52 = vand.u32 2147483648, %v3942_v14 }
 0x389   :  { %v1222_v20 = vpack.c.bf16 %v1210_v6, %v1209_v49  ;;  %v1159_v55 = vmul.f32 %v1132_v29, %v3926_v57  ;;  %v626_v29 = vmul.f32 %v3924_v35, %v625_v15  ;;  %v1089_v49 = vpop.f32.mrf.mxu3 }
 0x38b   :  { %1346 = vmatmul.bf16.gmra.mxu1 %v1222_v20  ;;  %1395 = vmatmul.bf16.gmra.mxu3 %v1222_v20  ;;  %v1175_v63 = vadd.f32 %v1159_v55, %v2932_v4  ;;  %v619_v4 = vand.u32 2147483648, %v3871_v11  ;;  %v627_v55 = vadd.f32 %v3924_v35, %v626_v29 }
 0x38d   :  { %v1195_v5 = vadd.f32 %v3734_v40, %v1175_v63  ;;  %v620_v11 = vor.u32 1.1754944e-38, %v619_v4  ;;  %v3976_v19 = vpop.eup %2483 }
 0x38e   :  { %v1133_v38 = vpop.f32.mrf.mxu0  ;;  %v654_v60 = vmul.f32 %v3976_v19, %v3942_v14 }
 0x38f   :  { %v1134_v39 = vadd.f32 %v1133_v38, %v1084_v34  ;;  %v1211_v20 = vmax.f32 %v1195_v5, 0.0  ;;  %v4001_v34 = vpop.eup %2485 }
 0x391   :  { %v1160_v42 = vmul.f32 %v1134_v39, %v3944_v48  ;;  %v641_v39 = vmul.f32 %v3949_v36, %v640_v24  ;;  %v1092_v25 = vpop.f32.mrf.mxu3 }
 0x393   :  { %v1176_v0 = vadd.f32 %v1160_v42, %v2940_v8  ;;  %v616_v8 = vsel %vm3955_vm7, %v3897_v32, %v612_v56  ;;  %v632_v32 = vand.u32 2147483647, %v3890_v61  ;;  %v631_v61 = vsel %vm3980_vm3, %v3924_v35, %v627_v55 }
 0x394   :  { %v3978_v59 = vsel %vm618_vm13, %v620_v11, %v616_v8  ;;  %v3994_v56 = vmax.f32 %v3625_v44, 1.0  ;;  %vm643_vm7 = vweird.f32 %v3919_v31  ;;  %vm644_vm13 = vweird.f32 %v3949_v36 }
 0x395   :  { %v1196_v43 = vadd.f32 %v3734_v40, %v1176_v0  ;;  %vm633_vm0 = vcmp.eq.f32.partialorder %v632_v32, 8.507059e+37  ;;  %v655_v0 = vsub.f32 1.0, %v654_v60  ;;  %v642_v5 = vadd.f32 %v3949_v36, %v641_v39  ;;  %vm4007_vm15 = vmor %vm643_vm7, %vm644_vm13 }
 0x396   :  { %v1136_v6 = vpop.f32.mrf.mxu0  ;;  %v3996_v4 = vsel %vm633_vm0, %v635_v10, %v631_v61  ;;  %2487 = vrcp.f32 %v3994_v56  ;;  %vm658_vm3 = vweird.f32 %v3942_v14  ;;  %vm659_vm0 = vweird.f32 %v3976_v19 }
 0x397   :  { %v1137_v30 = vadd.f32 %v1136_v6, %v1087_v23  ;;  %v1212_v33 = vmax.f32 %v1196_v43, 0.0  ;;  %v656_v11 = vmul.f32 %v3976_v19, %v655_v0  ;;  %v662_v32 = vand.u32 2147483647, %v3942_v14  ;;  %vm660_vm7 = vmor %vm658_vm3, %vm659_vm0 }
 0x398   :  { %v665_v60 = vor.u32 1.1754944e-38, %v664_v52 }
 0x399   :  { %v1223_v41 = vpack.c.bf16 %v1212_v33, %v1211_v20  ;;  %v1161_v38 = vmul.f32 %v1137_v30, %v3978_v59  ;;  %v657_v55 = vadd.f32 %v3976_v19, %v656_v11  ;;  %vm663_vm13 = vcmp.eq.f32.partialorder %v662_v32, 8.507059e+37 }
 0x39b   :  { %1351 = vmatmul.bf16.gmra.mxu1 %v1223_v41  ;;  %1400 = vmatmul.bf16.gmra.mxu3 %v1223_v41  ;;  %v1177_v15 = vadd.f32 %v1161_v38, %v2945_v9  ;;  %v647_v9 = vand.u32 2147483647, %v3919_v31  ;;  %v646_v31 = vsel %vm4007_vm15, %v3949_v36, %v642_v5  ;;  %v1094_v36 = vpop.f32.mrf.mxu3  ;;  %vm673_vm15 = vweird.f32 %v3971_v47 }
 0x39c   :  { %v2488_v24 = vpop.eup %2487 }
 0x39d   :  { %v1197_v29 = vadd.f32 %v3734_v40, %v1177_v15  ;;  %vm648_vm12 = vcmp.eq.f32.partialorder %v647_v9, 8.507059e+37  ;;  %v684_v61 = vmul.f32 %v2488_v24, %v3994_v56  ;;  %v679_v9 = vand.u32 2147483648, %v3971_v47 }
 0x39e   :  { %v1138_v63 = vpop.f32.mrf.mxu0 }
 0x39f   :  { %v1139_v42 = vadd.f32 %v1138_v63, %v1089_v49  ;;  %v669_v49 = vmul.f32 %v4001_v34, %v3971_v47  ;;  %v1213_v20 = vmax.f32 %v1197_v29, 0.0  ;;  %v661_v63 = vsel %vm660_vm7, %v3976_v19, %v657_v55 }
 0x3a0   :  { %v685_v0 = vsub.f32 1.0, %v684_v61  ;;  %v677_v19 = vand.u32 2147483647, %v3971_v47  ;;  %v680_v11 = vor.u32 1.1754944e-38, %v679_v9  ;;  %vm688_vm7 = vweird.f32 %v3994_v56 }
 0x3a1   :  { %v1162_v35 = vmul.f32 %v1139_v42, %v3996_v4  ;;  %v670_v23 = vsub.f32 1.0, %v669_v49 }
 0x3a2   :  { %v686_v49 = vmul.f32 %v2488_v24, %v685_v0  ;;  %vm678_vm0 = vcmp.eq.f32.partialorder %v677_v19, 8.507059e+37 }
 0x3a3   :  { %v1178_v44 = vadd.f32 %v1162_v35, %v2956_v13  ;;  %v650_v13 = vor.u32 1.1754944e-38, %v649_v2  ;;  %v671_v15 = vmul.f32 %v4001_v34, %v670_v23  ;;  %v1097_v43 = vpop.f32.mrf.mxu3 }
 0x3a5   :  { %v1198_v8 = vadd.f32 %v3734_v40, %v1178_v44  ;;  %v4025_v38 = vsel %vm648_vm12, %v650_v13, %v646_v31  ;;  %vm674_vm12 = vweird.f32 %v4001_v34  ;;  %v672_v5 = vadd.f32 %v4001_v34, %v671_v15 }
 0x3a6   :  { %v1141_v6 = vpop.f32.mrf.mxu0  ;;  %vm4041_vm3 = vmor %vm673_vm15, %vm674_vm12 }
 0x3a7   :  { %v1142_v30 = vadd.f32 %v1141_v6, %v1092_v25  ;;  %v1214_v33 = vmax.f32 %v1198_v8, 0.0  ;;  %v4032_v25 = vsel %vm663_vm13, %v665_v60, %v661_v63  ;;  %v676_v8 = vsel %vm4041_vm3, %v4001_v34, %v672_v5 }
 0x3a8   :  { %vm689_vm13 = vweird.f32 %v2488_v24  ;;  %v694_v6 = vand.u32 2147483648, %v3994_v56  ;;  %v4053_v52 = vsel %vm678_vm0, %v680_v11, %v676_v8  ;;  %vm4520_vm3 = vnez %v4395_v27 }
 0x3a9   :  { %v1224_v41 = vpack.c.bf16 %v1214_v33, %v1213_v20  ;;  %v1163_v10 = vmul.f32 %v1142_v30, %v4025_v38  ;;  %v687_v20 = vadd.f32 %v2488_v24, %v686_v49  ;;  %v692_v33 = vand.u32 2147483647, %v3994_v56  ;;  %vm690_vm15 = vmor %vm688_vm7, %vm689_vm13 }
 0x3ab   :  { %1356 = vmatmul.bf16.gmra.mxu1 %v1224_v41  ;;  %1405 = vmatmul.bf16.gmra.mxu3 %v1224_v41  ;;  %v1179_v14 = vadd.f32 %v1163_v10, %v2960_v16  ;;  %v695_v41 = vor.u32 1.1754944e-38, %v694_v6  ;;  %v691_v55 = vsel %vm690_vm15, %v2488_v24, %v687_v20  ;;  %vm693_vm12 = vcmp.eq.f32.partialorder %v692_v33, 8.507059e+37  ;;  %v1099_v32 = vpop.f32.mrf.mxu3 }
 0x3ad   :  { %v1199_v44 = vadd.f32 %v3734_v40, %v1179_v14  ;;  %v4057_v60 = vsel %vm693_vm12, %v695_v41, %v691_v55 }
 0x3ae   :  { %v1143_v39 = vpop.f32.mrf.mxu0 }
 0x3af   :  { %v1144_v42 = vadd.f32 %v1143_v39, %v1094_v36  ;;  %v1215_v47 = vmax.f32 %v1199_v44, 0.0 }
 0x3b1   :  { %v1164_v35 = vmul.f32 %v1144_v42, %v4032_v25 }
 0x3b3   :  { %v1180_v2 = vadd.f32 %v1164_v35, %v2969_v18 }
 0x3b5   :  { %v1200_v29 = vadd.f32 %v3734_v40, %v1180_v2 }
 0x3b6   :  { %v1146_v31 = vpop.f32.mrf.mxu0 }
 0x3b7   :  { %v1147_v18 = vadd.f32 %v1146_v31, %v1097_v43  ;;  %v1216_v13 = vmax.f32 %v1200_v29, 0.0 }
 0x3b9   :  { %v1225_v30 = vpack.c.bf16 %v1216_v13, %v1215_v47  ;;  %v1165_v34 = vmul.f32 %v1147_v18, %v4053_v52 }
 0x3bb   :  { %1361 = vmatmul.bf16.gmra.mxu1 %v1225_v30  ;;  %1410 = vmatmul.bf16.gmra.mxu3 %v1225_v30  ;;  %v1181_v36 = vadd.f32 %v1165_v34, %v2980_v22 }
 0x3bd   :  { %v1201_v63 = vadd.f32 %v3734_v40, %v1181_v36 }
 0x3be   :  { %v1148_v23 = vpop.f32.mrf.mxu0 }
 0x3bf   :  { %v1149_v10 = vadd.f32 %v1148_v23, %v1099_v32  ;;  %v1217_v15 = vmax.f32 %v1201_v63, 0.0  ;;  %v4521_v32 = vld [vmem:[#allocation14_spill] sm:$0xff] }
 0x3c0   :  { %vm4522_vm0 = vnez %v4521_v32 }
 0x3c1   :  { %v1166_v61 = vmul.f32 %v1149_v10, %v4057_v60 }
 0x3c3   :  { %v1182_v56 = vadd.f32 %v1166_v61, %v2982_v26  ;;  %v4523_v61 = vld [vmem:[#allocation15_spill] sm:$0xff] }
 0x3c4   :  { %vm4524_vm7 = vnez %v4523_v61 }
 0x3c5   :  { %v1202_v39 = vadd.f32 %v3734_v40, %v1182_v56 }
 0x3c7   :  { %v1218_v14 = vmax.f32 %v1202_v39, 0.0 }
 0x3c9   :  { %v1226_v42 = vpack.c.bf16 %v1218_v14, %v1217_v15  ;;  %v4525_v15 = vld [vmem:[#allocation16_spill] sm:$0xff] }
 0x3ca   :  { %vm4526_vm13 = vnez %v4525_v15 }
 0x3cb   :  { %1366 = vmatmul.bf16.gmra.mxu1 %v1226_v42  ;;  %1415 = vmatmul.bf16.gmra.mxu3 %v1226_v42 }
 0x3d8   :  { %v1332_v26 = vpop.f32.mrf.mxu0 }
 0x3e0   :  { %v1334_v40 = vpop.f32.mrf.mxu0 }
 0x3e1   :  { %v1421_v20 = vpack.c.bf16 %v1334_v40, %v1332_v26  ;;  %v4533_v26 = vld [vmem:[#allocation20_spill] sm:$0xff] }
 0x3e8   :  { %v1337_v31 = vpop.f32.mrf.mxu0 }
 0x3f0   :  { %v1339_v6 = vpop.f32.mrf.mxu0 }
 0x3f1   :  { %v1422_v30 = vpack.c.bf16 %v1339_v6, %v1337_v31 }
 0x3f8   :  { %v1342_v24 = vpop.f32.mrf.mxu1 }
 0x400   :  { %v1344_v0 = vpop.f32.mrf.mxu1 }
 0x401   :  { %v1423_v13 = vpack.c.bf16 %v1344_v0, %v1342_v24  ;;  %v4527_v0 = vld [vmem:[#allocation17_spill] sm:$0xff] }
 0x402   :  { %vm4528_vm15 = vnez %v4527_v0 }
 0x408   :  { %v1347_v35 = vpop.f32.mrf.mxu1 }
 0x410   :  { %v1349_v22 = vpop.f32.mrf.mxu1 }
 0x411   :  { %v1424_v47 = vpack.c.bf16 %v1349_v22, %v1347_v35 }
 0x418   :  { %v1352_v5 = vpop.f32.mrf.mxu1 }
 0x420   :  { %v1354_v19 = vpop.f32.mrf.mxu1 }
 0x421   :  { %v1425_v18 = vpack.c.bf16 %v1354_v19, %v1352_v5  ;;  %v4529_v5 = vld [vmem:[#allocation18_spill] sm:$0xff] }
 0x422   :  { %vm4530_vm12 = vnez %v4529_v5 }
 0x428   :  { %v1357_v9 = vpop.f32.mrf.mxu1 }
 0x430   :  { %v1359_v2 = vpop.f32.mrf.mxu1 }
 0x431   :  { %v1426_v11 = vpack.c.bf16 %v1359_v2, %v1357_v9  ;;  %v4531_v2 = vld [vmem:[#allocation19_spill] sm:$0xff] }
 0x438   :  { %v1362_v16 = vpop.f32.mrf.mxu1 }
 0x440   :  { %v1364_v44 = vpop.f32.mrf.mxu1 }
 0x441   :  { %v1427_v8 = vpack.c.bf16 %v1364_v44, %v1362_v16 }
 0x448   :  { %v1367_v43 = vpop.f32.mrf.mxu1 }
 0x450   :  { %v1369_v29 = vpop.f32.mrf.mxu1 }
 0x451   :  { %v1428_v49 = vpack.c.bf16 %v1369_v29, %v1367_v43 }
 0x453   :  { %1429 = vmatpush.bf16.msra.mxu0 %v1428_v49 }
 0x457   :  { %1430 = vmatpush.bf16.msra.mxu0 %v1427_v8 }
 0x45b   :  { %1431 = vmatpush.bf16.msra.mxu0 %v1426_v11 }
 0x45f   :  { %1432 = vmatpush.bf16.msra.mxu0 %v1425_v18 }
 0x463   :  { %1433 = vmatpush.bf16.msra.mxu0 %v1424_v47 }
 0x467   :  { %1434 = vmatpush.bf16.msra.mxu0 %v1423_v13 }
 0x46b   :  { %1435 = vmatpush.bf16.msra.mxu0 %v1422_v30  ;;  %v4535_v30 = vld [vmem:[#allocation21_spill] sm:$0xff] }
 0x46f   :  { %1436 = vmatpush.bf16.msra.mxu0 %v1421_v20 }
 0x472   :  { %2241 = vmatmul.msk.bf16.vlgmr.msra.gmra.mxu0 %vm2890_vm2, %v4424_v28 }
 0x482   :  { %2243 = vmatmul.msk.bf16.gmra.mxu0 %vm2901_vm5, %v4424_v28 }
 0x492   :  { %2245 = vmatmul.msk.bf16.gmra.mxu0 %vm2912_vm8, %v4424_v28 }
 0x4a2   :  { %2247 = vmatmul.msk.bf16.gmra.mxu0 %vm2925_vm11, %v4424_v28 }
 0x4b2   :  { %2249 = vmatmul.msk.bf16.gmra.mxu0 %vm2936_vm14, %v4424_v28 }
 0x4c2   :  { %2251 = vmatmul.msk.bf16.gmra.mxu0 %vm2949_vm1, %v4424_v28 }
 0x4d2   :  { %2253 = vmatmul.msk.bf16.gmra.mxu0 %vm2962_vm6, %v4424_v28 }
 0x4e2   :  { %2255 = vmatmul.msk.bf16.gmra.mxu0 %vm2973_vm10, %v4424_v28 }
 0x4ef   :  { %v1438_v33 = vpop.f32.mrf.mxu0 }
 0x4f2   :  { %2257 = vmatmul.msk.bf16.gmra.mxu0 %vm4520_vm3, %v4424_v28 }
 0x4f7   :  { %v1440_v34 = vpop.f32.mrf.mxu0 }
 0x4f8   :  { %v1518_v41 = vpack.c.bf16 %v1440_v34, %v1438_v33 }
 0x4ff   :  { %v1443_v55 = vpop.f32.mrf.mxu0 }
 0x502   :  { %2259 = vmatmul.msk.bf16.gmra.mxu0 %vm4522_vm0, %v4424_v28 }
 0x507   :  { %v1445_v23 = vpop.f32.mrf.mxu0 }
 0x508   :  { %v1519_v36 = vpack.c.bf16 %v1445_v23, %v1443_v55  ;;  %v4537_v55 = vld [vmem:[#allocation22_spill] sm:$0xff] }
 0x50f   :  { %v1448_v10 = vpop.f32.mrf.mxu0 }
 0x512   :  { %2261 = vmatmul.msk.bf16.gmra.mxu0 %vm4524_vm7, %v4424_v28  ;;  %vm4532_vm7 = vnez %v4531_v2 }
 0x517   :  { %v1450_v56 = vpop.f32.mrf.mxu0 }
 0x518   :  { %v1520_v63 = vpack.c.bf16 %v1450_v56, %v1448_v10 }
 0x51f   :  { %v1453_v39 = vpop.f32.mrf.mxu0 }
 0x522   :  { %2263 = vmatmul.msk.bf16.gmra.mxu0 %vm4526_vm13, %v4424_v28  ;;  %vm4534_vm13 = vnez %v4533_v26 }
 0x527   :  { %v1455_v14 = vpop.f32.mrf.mxu0 }
 0x528   :  { %v1521_v42 = vpack.c.bf16 %v1455_v14, %v1453_v39  ;;  %v4563_v39 = vld [vmem:[#allocation36_spill] sm:$0xff] }
 0x52f   :  { %v1458_v24 = vpop.f32.mrf.mxu0 }
 0x532   :  { %2265 = vmatmul.msk.bf16.gmra.mxu0 %vm4528_vm15, %v4424_v28 }
 0x537   :  { %v1460_v35 = vpop.f32.mrf.mxu0 }
 0x538   :  { %v1522_v11 = vpack.c.bf16 %v1460_v35, %v1458_v24 }
 0x53f   :  { %v1463_v22 = vpop.f32.mrf.mxu0 }
 0x542   :  { %2267 = vmatmul.msk.bf16.gmra.mxu0 %vm4530_vm12, %v4424_v28 }
 0x547   :  { %v1465_v19 = vpop.f32.mrf.mxu0 }
 0x548   :  { %v1523_v8 = vpack.c.bf16 %v1465_v19, %v1463_v22  ;;  %v4543_v19 = vld [vmem:[#allocation29_spill] sm:$0xff] }
 0x54f   :  { %v1468_v9 = vpop.f32.mrf.mxu0 }
 0x552   :  { %2269 = vmatmul.msk.bf16.gmra.mxu0 %vm4532_vm7, %v4424_v28  ;;  %vm4538_vm7 = vnez %v4537_v55  ;;  %v2412_v55 = vld [vmem:[#allocation5 + $0x20] sm:$0xff] }
 0x557   :  { %v1470_v16 = vpop.f32.mrf.mxu0 }
 0x558   :  { %v1524_v49 = vpack.c.bf16 %v1470_v16, %v1468_v9 }
 0x55f   :  { %v1473_v44 = vpop.f32.mrf.mxu0 }
 0x562   :  { %2271 = vmatmul.msk.bf16.gmra.mxu0 %vm4534_vm13, %v4424_v28  ;;  %vm4536_vm13 = vnez %v4535_v30  ;;  %v4557_v30 = vld [vmem:[#allocation32_spill] sm:$0xff] }
 0x567   :  { %v1475_v43 = vpop.f32.mrf.mxu0 }
 0x568   :  { %v1525_v29 = vpack.c.bf16 %v1475_v43, %v1473_v44  ;;  %v4545_v43 = vld [vmem:[#allocation31_spill] sm:$0xff] }
 0x56a   :  { %1534 = vmatpush.bf16.msrb.mxu1 %v1525_v29 }
 0x56e   :  { %1535 = vmatpush.bf16.msrb.mxu1 %v1524_v49 }
 0x56f   :  { %v1478_v40 = vpop.f32.mrf.mxu0 }
 0x572   :  { %1536 = vmatpush.bf16.msrb.mxu1 %v1523_v8  ;;  %v4547_v8 = vld [vmem:[#allocation33_spill] sm:$0xff] }
 0x576   :  { %1537 = vmatpush.bf16.msrb.mxu1 %v1522_v11  ;;  %v4549_v11 = vld [vmem:[#allocation25_spill] sm:$0xff] }
 0x577   :  { %v1480_v31 = vpop.f32.mrf.mxu0 }
 0x578   :  { %v1526_v18 = vpack.c.bf16 %v1480_v31, %v1478_v40  ;;  %v4551_v31 = vld [vmem:[#allocation27_spill] sm:$0xff] }
 0x57a   :  { %1538 = vmatpush.bf16.msrb.mxu1 %v1521_v42 }
 0x57e   :  { %1539 = vmatpush.bf16.msrb.mxu1 %v1520_v63  ;;  %v4539_v63 = vld [vmem:[#allocation23_spill] sm:$0xff] }
 0x57f   :  { %v1483_v47 = vpop.f32.mrf.mxu0  ;;  %vm4540_vm12 = vnez %v4539_v63  ;;  %v2410_v63 = vld [vmem:[#allocation5 + $0x10] sm:$0xff] }
 0x582   :  { %1540 = vmatpush.bf16.msrb.mxu1 %v1519_v36 }
 0x586   :  { %1541 = vmatpush.bf16.msrb.mxu1 %v1518_v41 }
 0x587   :  { %v1485_v13 = vpop.f32.mrf.mxu0 }
 0x588   :  { %v1527_v6 = vpack.c.bf16 %v1485_v13, %v1483_v47  ;;  %v4553_v47 = vld [vmem:[#allocation24_spill] sm:$0xff]  ;;  %v4555_v13 = vld [vmem:[#allocation30_spill] sm:$0xff] }
 0x589   :  { %2273 = vmatmul.msk.bf16.vlgmr.msrb.gmra.mxu1 %vm4536_vm13, %v4424_v28  ;;  %vm4546_vm13 = vnez %v4545_v43 }
 0x58f   :  { %v1488_v20 = vpop.f32.mrf.mxu0 }
 0x597   :  { %v1490_v33 = vpop.f32.mrf.mxu0 }
 0x598   :  { %v1528_v34 = vpack.c.bf16 %v1490_v33, %v1488_v20  ;;  %v2414_v20 = vld [vmem:[#allocation5 + $0x30] sm:$0xff]  ;;  %v2413_v33 = vld [vmem:[#allocation5 + $0x28] sm:$0xff] }
 0x599   :  { %2275 = vmatmul.msk.bf16.gmra.mxu1 %vm4538_vm7, %v4424_v28  ;;  %vm4544_vm7 = vnez %v4543_v19 }
 0x59f   :  { %v1493_v23 = vpop.f32.mrf.mxu0 }
 0x5a7   :  { %v1495_v10 = vpop.f32.mrf.mxu0 }
 0x5a8   :  { %v1529_v56 = vpack.c.bf16 %v1495_v10, %v1493_v23  ;;  %v2411_v10 = vld [vmem:[#allocation5 + $0x18] sm:$0xff] }
 0x5a9   :  { %2277 = vmatmul.msk.bf16.gmra.mxu1 %vm4540_vm12, %v4424_v28  ;;  %vm4552_vm12 = vnez %v4551_v31 }
 0x5af   :  { %v1498_v41 = vpop.f32.mrf.mxu0 }
 0x5b7   :  { %v1500_v36 = vpop.f32.mrf.mxu0 }
 0x5b8   :  { %v1530_v40 = vpack.c.bf16 %v1500_v36, %v1498_v41  ;;  %v2409_v41 = vld [vmem:[#allocation5 + $0x8] sm:$0xff] }
 0x5b9   :  { %2279 = vmatmul.msk.bf16.gmra.mxu1 %vm3410_vm4, %v4424_v28  ;;  %vm4548_vm4 = vnez %v4547_v8  ;;  %v4163_v8 = vld [vmem:[%s4281_s6] ss:$0 sm:$0xff] }
 0x5bf   :  { %v1503_v14 = vpop.f32.mrf.mxu0 }
 0x5c7   :  { %v1505_v42 = vpop.f32.mrf.mxu0 }
 0x5c8   :  { %v1531_v49 = vpack.c.bf16 %v1505_v42, %v1503_v14  ;;  %v2408_v14 = vld [vmem:[#allocation5] sm:$0xff] }
 0x5c9   :  { %2281 = vmatmul.msk.bf16.gmra.mxu1 %vm3434_vm9, %v4424_v28  ;;  %vm4550_vm9 = vnez %v4549_v11  ;;  %v4565_v11 = vld [vmem:[#allocation37_spill] sm:$0xff] }
 0x5cf   :  { %v1508_v35 = vpop.f32.mrf.mxu0 }
 0x5d7   :  { %v1510_v22 = vpop.f32.mrf.mxu0 }
 0x5d8   :  { %v1532_v29 = vpack.c.bf16 %v1510_v22, %v1508_v35 }
 0x5d9   :  { %2283 = vmatmul.msk.bf16.gmra.mxu1 %vm4544_vm7, %v4424_v28  ;;  %vm4554_vm7 = vnez %v4553_v47 }
 0x5df   :  { %v1513_v9 = vpop.f32.mrf.mxu0 }
 0x5e7   :  { %v1515_v16 = vpop.f32.mrf.mxu0 }
 0x5e8   :  { %v1533_v44 = vpack.c.bf16 %v1515_v16, %v1513_v9 }
 0x5e9   :  { %2285 = vmatmul.msk.bf16.gmra.mxu1 %vm4546_vm13, %v4424_v28  ;;  %vm4556_vm13 = vnez %v4555_v13 }
 0x5ea   :  { %1583 = vmatpush.bf16.msra.mxu2 %v1533_v44 }
 0x5ee   :  { %1584 = vmatpush.bf16.msra.mxu2 %v1532_v29 }
 0x5f2   :  { %1585 = vmatpush.bf16.msra.mxu2 %v1531_v49 }
 0x5f6   :  { %1586 = vmatpush.bf16.msra.mxu2 %v1530_v40 }
 0x5f9   :  { %2287 = vmatmul.msk.bf16.gmra.mxu1 %vm4548_vm4, %v4424_v28  ;;  %vm4558_vm4 = vnez %v4557_v30 }
 0x5fa   :  { %1587 = vmatpush.bf16.msra.mxu2 %v1529_v56  ;;  %v1381_v56 = vpop.f32.mrf.mxu3 }
 0x5fe   :  { %1588 = vmatpush.bf16.msra.mxu2 %v1528_v34  ;;  %v4561_v34 = vld [vmem:[#allocation35_spill] sm:$0xff] }
 0x602   :  { %1589 = vmatpush.bf16.msra.mxu2 %v1527_v6  ;;  %v2415_v6 = vld [vmem:[#allocation5 + $0x38] sm:$0xff]  ;;  %v1383_v42 = vpop.f32.mrf.mxu3 }
 0x603   :  { %1760 = vmatpush.bf16.msrb.mxu3 %v2415_v6 }
 0x606   :  { %1590 = vmatpush.bf16.msra.mxu2 %v1526_v18  ;;  %v4559_v18 = vld [vmem:[#allocation34_spill] sm:$0xff]  ;;  %v1543_v23 = vpop.f32.mrf.mxu1 }
 0x607   :  { %vm4560_vm15 = vnez %v4559_v18  ;;  %1761 = vmatpush.bf16.msrb.mxu3 %v2414_v20 }
 0x609   :  { %2289 = vmatmul.msk.bf16.vlgmr.msra.gmra.mxu2 %vm4550_vm9, %v4424_v28  ;;  %vm4562_vm9 = vnez %v4561_v34 }
 0x60a   :  { %v1386_v35 = vpop.f32.mrf.mxu3 }
 0x60b   :  { %1762 = vmatpush.bf16.msrb.mxu3 %v2413_v33 }
 0x60e   :  { %v1545_v36 = vpop.f32.mrf.mxu1 }
 0x60f   :  { %1763 = vmatpush.bf16.msrb.mxu3 %v2412_v55 }
 0x612   :  { %v1388_v16 = vpop.f32.mrf.mxu3 }
 0x613   :  { %1764 = vmatpush.bf16.msrb.mxu3 %v2411_v10 }
 0x616   :  { %v1548_v24 = vpop.f32.mrf.mxu1 }
 0x617   :  { %1765 = vmatpush.bf16.msrb.mxu3 %v2410_v63 }
 0x619   :  { %2291 = vmatmul.msk.bf16.gmra.mxu2 %vm4552_vm12, %v4424_v28 }
 0x61a   :  { %v1391_v13 = vpop.f32.mrf.mxu3 }
 0x61b   :  { %1766 = vmatpush.bf16.msrb.mxu3 %v2409_v41 }
 0x61e   :  { %v1550_v19 = vpop.f32.mrf.mxu1 }
 0x61f   :  { %1767 = vmatpush.bf16.msrb.mxu3 %v2408_v14 }
 0x622   :  { %v1393_v55 = vpop.f32.mrf.mxu3 }
 0x626   :  { %v1553_v49 = vpop.f32.mrf.mxu1 }
 0x629   :  { %2293 = vmatmul.msk.bf16.gmra.mxu2 %vm4554_vm7, %v4424_v28 }
 0x62e   :  { %v1555_v33 = vpop.f32.mrf.mxu1 }
 0x639   :  { %2295 = vmatmul.msk.bf16.gmra.mxu2 %vm4556_vm13, %v4424_v28 }
 0x649   :  { %2297 = vmatmul.msk.bf16.gmra.mxu2 %vm4558_vm4, %v4424_v28 }
 0x659   :  { %2299 = vmatmul.msk.bf16.gmra.mxu2 %vm4560_vm15, %v4424_v28  ;;  %vm4564_vm15 = vnez %v4563_v39 }
 0x669   :  { %2301 = vmatmul.msk.bf16.gmra.mxu2 %vm4562_vm9, %v4424_v28 }
 0x679   :  { %2303 = vmatmul.msk.bf16.gmra.mxu2 %vm4564_vm15, %v4424_v28 }
 0x68c   :  { %v1592_v22 = vpop.f32.mrf.mxu2 }
 0x68d   :  { %v1593_v9 = vadd.f32 %v1592_v22, %v1543_v23 }
 0x68f   :  { %v1632_v44 = vmul.f32 %v1593_v9, %v3717_v46 }
 0x691   :  { %v1648_v40 = vadd.f32 %v1632_v44, %v1381_v56 }
 0x693   :  { %v1668_v30 = vadd.f32 %v4163_v8, %v1648_v40 }
 0x694   :  { %v1594_v43 = vpop.f32.mrf.mxu2 }
 0x695   :  { %v1595_v29 = vadd.f32 %v1594_v43, %v1545_v36  ;;  %v1558_v36 = vpop.f32.mrf.mxu1 }
 0x697   :  { %v1633_v31 = vmul.f32 %v1595_v29, %v4565_v11 }
 0x699   :  { %v1649_v47 = vadd.f32 %v1633_v31, %v1383_v42 }
 0x69b   :  { %v1669_v18 = vadd.f32 %v4163_v8, %v1649_v47 }
 0x69c   :  { %v1597_v6 = vpop.f32.mrf.mxu2 }
 0x69d   :  { %v4168_v20 = vpack.c.bf16 %v1669_v18, %v1668_v30  ;;  %v1598_v46 = vadd.f32 %v1597_v6, %v1548_v24  ;;  %v1396_v24 = vpop.f32.mrf.mxu3 }
 0x69f   :  { %1768 = vmatmul.bf16.vlgmr.msrb.gmra.mxu3 %v4168_v20  ;;  %v1634_v34 = vmul.f32 %v1598_v46, %v3772_v54 }
 0x6a1   :  { %v1650_v56 = vadd.f32 %v1634_v34, %v1386_v35 }
 0x6a3   :  { %v1670_v39 = vadd.f32 %v4163_v8, %v1650_v56 }
 0x6a4   :  { %v1599_v23 = vpop.f32.mrf.mxu2 }
 0x6a5   :  { %v1600_v10 = vadd.f32 %v1599_v23, %v1550_v19  ;;  %v1560_v19 = vpop.f32.mrf.mxu1 }
 0x6a7   :  { %v1635_v63 = vmul.f32 %v1600_v10, %v3781_v51 }
 0x6a9   :  { %v1651_v41 = vadd.f32 %v1635_v63, %v1388_v16  ;;  %v1398_v16 = vpop.f32.mrf.mxu3 }
 0x6ab   :  { %v1671_v14 = vadd.f32 %v4163_v8, %v1651_v41 }
 0x6ac   :  { %v1602_v42 = vpop.f32.mrf.mxu2 }
 0x6ad   :  { %v4175_v22 = vpack.c.bf16 %v1671_v14, %v1670_v39  ;;  %v1603_v9 = vadd.f32 %v1602_v42, %v1553_v49  ;;  %v1563_v49 = vpop.f32.mrf.mxu1 }
 0x6af   :  { %1773 = vmatmul.bf16.gmra.mxu3 %v4175_v22  ;;  %v1636_v54 = vmul.f32 %v1603_v9, %v3822_v1 }
 0x6b1   :  { %v1652_v43 = vadd.f32 %v1636_v54, %v1391_v13  ;;  %v1401_v1 = vpop.f32.mrf.mxu3 }
 0x6b3   :  { %v1672_v40 = vadd.f32 %v4163_v8, %v1652_v43 }
 0x6b4   :  { %v1604_v44 = vpop.f32.mrf.mxu2 }
 0x6b5   :  { %v1605_v35 = vadd.f32 %v1604_v44, %v1555_v33  ;;  %v1565_v33 = vpop.f32.mrf.mxu1 }
 0x6b7   :  { %v1637_v51 = vmul.f32 %v1605_v35, %v3840_v37 }
 0x6b9   :  { %v1653_v29 = vadd.f32 %v1637_v51, %v1393_v55  ;;  %v1403_v10 = vpop.f32.mrf.mxu3 }
 0x6bb   :  { %v1673_v11 = vadd.f32 %v4163_v8, %v1653_v29 }
 0x6bc   :  { %v1607_v31 = vpop.f32.mrf.mxu2 }
 0x6bd   :  { %v4182_v47 = vpack.c.bf16 %v1673_v11, %v1672_v40  ;;  %v1608_v30 = vadd.f32 %v1607_v31, %v1558_v36  ;;  %v1568_v36 = vpop.f32.mrf.mxu1 }
 0x6bf   :  { %1778 = vmatmul.bf16.gmra.mxu3 %v4182_v47  ;;  %v1638_v18 = vmul.f32 %v1608_v30, %v3880_v45 }
 0x6c1   :  { %v1654_v46 = vadd.f32 %v1638_v18, %v1396_v24  ;;  %v1406_v42 = vpop.f32.mrf.mxu3 }
 0x6c3   :  { %v1674_v55 = vadd.f32 %v4163_v8, %v1654_v46 }
 0x6c4   :  { %v1609_v6 = vpop.f32.mrf.mxu2 }
 0x6c5   :  { %v1610_v13 = vadd.f32 %v1609_v6, %v1560_v19  ;;  %v1570_v35 = vpop.f32.mrf.mxu1 }
 0x6c7   :  { %v1639_v37 = vmul.f32 %v1610_v13, %v3892_v50 }
 0x6c9   :  { %v1655_v34 = vadd.f32 %v1639_v37, %v1398_v16  ;;  %v1408_v16 = vpop.f32.mrf.mxu3 }
 0x6cb   :  { %v1675_v23 = vadd.f32 %v4163_v8, %v1655_v34 }
 0x6cc   :  { %v1612_v56 = vpop.f32.mrf.mxu2 }
 0x6cd   :  { %v4189_v63 = vpack.c.bf16 %v1675_v23, %v1674_v55  ;;  %v1613_v41 = vadd.f32 %v1612_v56, %v1563_v49  ;;  %v1573_v11 = vpop.f32.mrf.mxu1 }
 0x6cf   :  { %1783 = vmatmul.bf16.gmra.mxu3 %v4189_v63  ;;  %v1640_v45 = vmul.f32 %v1613_v41, %v3926_v57 }
 0x6d1   :  { %v1656_v50 = vadd.f32 %v1640_v45, %v1401_v1  ;;  %v1411_v30 = vpop.f32.mrf.mxu3 }
 0x6d3   :  { %v1676_v54 = vadd.f32 %v4163_v8, %v1656_v50 }
 0x6d4   :  { %v1614_v39 = vpop.f32.mrf.mxu2 }
 0x6d5   :  { %v1615_v14 = vadd.f32 %v1614_v39, %v1565_v33  ;;  %v1575_v37 = vpop.f32.mrf.mxu1 }
 0x6d7   :  { %v1641_v24 = vmul.f32 %v1615_v14, %v3944_v48 }
 0x6d9   :  { %v1657_v9 = vadd.f32 %v1641_v24, %v1403_v10 }
 0x6db   :  { %v1677_v44 = vadd.f32 %v4163_v8, %v1657_v9 }
 0x6dc   :  { %v1617_v19 = vpop.f32.mrf.mxu2 }
 0x6dd   :  { %v1688_v43 = vpack.c.bf16 %v1677_v44, %v1676_v54  ;;  %v1618_v51 = vadd.f32 %v1617_v19, %v1568_v36  ;;  %v1578_v56 = vpop.f32.mrf.mxu1 }
 0x6df   :  { %1788 = vmatmul.bf16.gmra.mxu3 %v1688_v43  ;;  %v1642_v29 = vmul.f32 %v1618_v51, %v3978_v59  ;;  %v1413_v59 = vpop.f32.mrf.mxu3 }
 0x6e1   :  { %v1658_v31 = vadd.f32 %v1642_v29, %v1406_v42 }
 0x6e3   :  { %v1678_v1 = vadd.f32 %v4163_v8, %v1658_v31 }
 0x6e4   :  { %v1619_v57 = vpop.f32.mrf.mxu2 }
 0x6e5   :  { %v1620_v40 = vadd.f32 %v1619_v57, %v1570_v35 }
 0x6e7   :  { %v1643_v49 = vmul.f32 %v1620_v40, %v3996_v4  ;;  %v1416_v14 = vpop.f32.mrf.mxu3 }
 0x6e9   :  { %v1659_v48 = vadd.f32 %v1643_v49, %v1408_v16 }
 0x6eb   :  { %v1679_v18 = vadd.f32 %v4163_v8, %v1659_v48 }
 0x6ec   :  { %v1622_v6 = vpop.f32.mrf.mxu2 }
 0x6ed   :  { %v1689_v13 = vpack.c.bf16 %v1679_v18, %v1678_v1  ;;  %v1623_v46 = vadd.f32 %v1622_v6, %v1573_v11 }
 0x6ef   :  { %1793 = vmatmul.bf16.gmra.mxu3 %v1689_v13  ;;  %v1644_v33 = vmul.f32 %v1623_v46, %v4025_v38  ;;  %v1580_v38 = vpop.f32.mrf.mxu1 }
 0x6f1   :  { %v1660_v23 = vadd.f32 %v1644_v33, %v1411_v30 }
 0x6f3   :  { %v1680_v41 = vadd.f32 %v4163_v8, %v1660_v23 }
 0x6f4   :  { %v1624_v34 = vpop.f32.mrf.mxu2 }
 0x6f5   :  { %v1625_v55 = vadd.f32 %v1624_v34, %v1575_v37 }
 0x6f7   :  { %v1645_v10 = vmul.f32 %v1625_v55, %v4032_v25  ;;  %v1418_v25 = vpop.f32.mrf.mxu3 }
 0x6f9   :  { %v1661_v4 = vadd.f32 %v1645_v10, %v1413_v59 }
 0x6fb   :  { %v1681_v36 = vadd.f32 %v4163_v8, %v1661_v4 }
 0x6fc   :  { %v1627_v45 = vpop.f32.mrf.mxu2 }
 0x6fd   :  { %v1690_v39 = vpack.c.bf16 %v1681_v36, %v1680_v41  ;;  %v1628_v42 = vadd.f32 %v1627_v45, %v1578_v56 }
 0x6ff   :  { %1798 = vmatmul.bf16.gmra.mxu3 %v1690_v39  ;;  %v1646_v50 = vmul.f32 %v1628_v42, %v4053_v52  ;;  %v2456_v52 = vld [vmem:[%s4283_s8] ss:$0 sm:$0xff]  ;;  %s2600_s8 = smov [#allocation7]  }
 0x700   :  { %s1982_s15 = sshll.u32 %s2600_s8, 4  ;;  %s1983_s15 = int_to_ptr.vmem [resolvable:$true] %s1982_s15 }
 0x701   :  { %v1662_v54 = vadd.f32 %v1646_v50, %v1416_v14 }
 0x703   :  { %v1682_v35 = vadd.f32 %v4163_v8, %v1662_v54 }
 0x704   :  { %v1629_v24 = vpop.f32.mrf.mxu2 }
 0x705   :  { %v1630_v9 = vadd.f32 %v1629_v24, %v1580_v38 }
 0x707   :  { %v1647_v44 = vmul.f32 %v1630_v9, %v4057_v60 }
 0x709   :  { %v1663_v19 = vadd.f32 %v1647_v44, %v1418_v25 }
 0x70b   :  { %v1683_v51 = vadd.f32 %v4163_v8, %v1663_v19 }
 0x70d   :  { %v1691_v16 = vpack.c.bf16 %v1683_v51, %v1682_v35 }
 0x70f   :  { %1803 = vmatmul.bf16.gmra.mxu3 %v1691_v16  ;;  %1825 = vmatpush.bf16.msra.mxu1 %v1691_v16 }
 0x713   :  { %1826 = vmatpush.bf16.msra.mxu1 %v1690_v39 }
 0x717   :  { %1827 = vmatpush.bf16.msra.mxu1 %v1689_v13 }
 0x71b   :  { %1828 = vmatpush.bf16.msra.mxu1 %v1688_v43 }
 0x71f   :  { %1829 = vmatpush.bf16.msra.mxu1 %v4189_v63 }
 0x722   :  { %v1769_v29 = vpop.f32.mrf.mxu3 }
 0x723   :  { %v1770_v60 = vadd.f32 %v2456_v52, %v1769_v29  ;;  %1830 = vmatpush.bf16.msra.mxu1 %v4182_v47 }
 0x725   :  { %1809 = vst [vmem:[#allocation7] sm:$0xff] %v1770_v60 }
 0x727   :  { %1831 = vmatpush.bf16.msra.mxu1 %v4175_v22 }
 0x72a   :  { %v1771_v8 = vpop.f32.mrf.mxu3 }
 0x72b   :  { %v1772_v57 = vadd.f32 %v2456_v52, %v1771_v8  ;;  %1832 = vmatpush.bf16.msra.mxu1 %v4168_v20 }
 0x72d   :  { %1810 = vst [vmem:[#allocation7 + $0x8] sm:$0xff] %v1772_v57 }
 0x72e   :  { %2337 = vmatmul.msk.bf16.vlgmr.msra.gmra.mxu1 %vm2890_vm2, %v4424_v28  ;;  %vm4566_vm2 = vnez %v4523_v61 }
 0x732   :  { %v1774_v63 = vpop.f32.mrf.mxu3 }
 0x733   :  { %v1775_v43 = vadd.f32 %v2456_v52, %v1774_v63 }
 0x735   :  { %1811 = vst [vmem:[#allocation7 + $0x10] sm:$0xff] %v1775_v43 }
 0x73a   :  { %v1776_v40 = vpop.f32.mrf.mxu3 }
 0x73b   :  { %v1777_v11 = vadd.f32 %v2456_v52, %v1776_v40 }
 0x73d   :  { %1812 = vst [vmem:[#allocation7 + $0x18] sm:$0xff] %v1777_v11 }
 0x73e   :  { %2339 = vmatmul.msk.bf16.gmra.mxu1 %vm2901_vm5, %v4424_v28  ;;  %vm4567_vm5 = vnez %v4525_v15 }
 0x742   :  { %v1779_v22 = vpop.f32.mrf.mxu3 }
 0x743   :  { %v1780_v47 = vadd.f32 %v2456_v52, %v1779_v22 }
 0x745   :  { %1813 = vst [vmem:[#allocation7 + $0x20] sm:$0xff] %v1780_v47 }
 0x74a   :  { %v1781_v31 = vpop.f32.mrf.mxu3 }
 0x74b   :  { %v1782_v20 = vadd.f32 %v2456_v52, %v1781_v31 }
 0x74d   :  { %1814 = vst [vmem:[#allocation7 + $0x28] sm:$0xff] %v1782_v20 }
 0x74e   :  { %2341 = vmatmul.msk.bf16.gmra.mxu1 %vm2912_vm8, %v4424_v28  ;;  %vm4568_vm8 = vnez %v4527_v0 }
 0x752   :  { %v1784_v53 = vpop.f32.mrf.mxu3 }
 0x753   :  { %v1785_v49 = vadd.f32 %v2456_v52, %v1784_v53 }
 0x755   :  { %1815 = vst [vmem:[#allocation7 + $0x30] sm:$0xff] %v1785_v49 }
 0x75a   :  { %v1786_v48 = vpop.f32.mrf.mxu3 }
 0x75b   :  { %v1787_v30 = vadd.f32 %v2456_v52, %v1786_v48 }
 0x75d   :  { %1816 = vst [vmem:[#allocation7 + $0x38] sm:$0xff] %v1787_v30 }
 0x75e   :  { %2343 = vmatmul.msk.bf16.gmra.mxu1 %vm2925_vm11, %v4424_v28  ;;  %vm4569_vm11 = vnez %v4529_v5 }
 0x762   :  { %v1789_v58 = vpop.f32.mrf.mxu3 }
 0x763   :  { %v1790_v1 = vadd.f32 %v2456_v52, %v1789_v58 }
 0x765   :  { %1817 = vst [vmem:[#allocation7 + $0x40] sm:$0xff] %v1790_v1 }
 0x76a   :  { %v1791_v18 = vpop.f32.mrf.mxu3 }
 0x76b   :  { %v1792_v6 = vadd.f32 %v2456_v52, %v1791_v18 }
 0x76d   :  { %1818 = vst [vmem:[#allocation7 + $0x48] sm:$0xff] %v1792_v6 }
 0x76e   :  { %2345 = vmatmul.msk.bf16.gmra.mxu1 %vm2936_vm14, %v4424_v28  ;;  %vm4570_vm14 = vnez %v4531_v2 }
 0x772   :  { %v1794_v62 = vpop.f32.mrf.mxu3 }
 0x773   :  { %v1795_v13 = vadd.f32 %v2456_v52, %v1794_v62 }
 0x775   :  { %1819 = vst [vmem:[#allocation7 + $0x50] sm:$0xff] %v1795_v13 }
 0x77a   :  { %v1796_v46 = vpop.f32.mrf.mxu3 }
 0x77b   :  { %v1797_v37 = vadd.f32 %v2456_v52, %v1796_v46 }
 0x77d   :  { %1820 = vst [vmem:[#allocation7 + $0x58] sm:$0xff] %v1797_v37 }
 0x77e   :  { %2347 = vmatmul.msk.bf16.gmra.mxu1 %vm2949_vm1, %v4424_v28  ;;  %vm4571_vm1 = vnez %v4533_v26 }
 0x782   :  { %v1799_v3 = vpop.f32.mrf.mxu3 }
 0x783   :  { %v1800_v33 = vadd.f32 %v2456_v52, %v1799_v3 }
 0x785   :  { %1821 = vst [vmem:[#allocation7 + $0x60] sm:$0xff] %v1800_v33 }
 0x78a   :  { %v1801_v59 = vpop.f32.mrf.mxu3 }
 0x78b   :  { %v1802_v34 = vadd.f32 %v2456_v52, %v1801_v59 }
 0x78d   :  { %1822 = vst [vmem:[#allocation7 + $0x68] sm:$0xff] %v1802_v34 }
 0x78e   :  { %2349 = vmatmul.msk.bf16.gmra.mxu1 %vm2962_vm6, %v4424_v28 }
 0x792   :  { %v1804_v7 = vpop.f32.mrf.mxu3 }
 0x793   :  { %v1805_v55 = vadd.f32 %v2456_v52, %v1804_v7 }
 0x795   :  { %1823 = vst [vmem:[#allocation7 + $0x70] sm:$0xff] %v1805_v55 }
 0x79a   :  { %v1806_v23 = vpop.f32.mrf.mxu3 }
 0x79b   :  { %v1807_v10 = vadd.f32 %v2456_v52, %v1806_v23 }
 0x79d   :  { %1824 = vst [vmem:[#allocation7 + $0x78] sm:$0xff] %v1807_v10 }
 0x79e   :  { %2351 = vmatmul.msk.bf16.gmra.mxu1 %vm2973_vm10, %v4424_v28  ;;  %1990 = dma.vmem_to_hbm [thread:$0]  %s1983_s15, 2048, %s1985_s18, [#allocation4], %s2601_s19, %s2601_s19, %s2602_s20  }
 0x7ab   :  { %v1834_v12 = vpop.f32.mrf.mxu1 }
 0x7ae   :  { %2353 = vmatmul.msk.bf16.gmra.mxu1 %vm4520_vm3, %v4424_v28 }
 0x7b3   :  { %v1836_v4 = vpop.f32.mrf.mxu1 }
 0x7bb   :  { %v1839_v56 = vpop.f32.mrf.mxu1 }
 0x7be   :  { %2355 = vmatmul.msk.bf16.gmra.mxu1 %vm4522_vm0, %v4424_v28 }
 0x7c3   :  { %v1841_v17 = vpop.f32.mrf.mxu1 }
 0x7cb   :  { %v1844_v41 = vpop.f32.mrf.mxu1 }
 0x7ce   :  { %2357 = vmatmul.msk.bf16.gmra.mxu1 %vm4566_vm2, %v4424_v28 }
 0x7d3   :  { %v1846_v36 = vpop.f32.mrf.mxu1 }
 0x7db   :  { %v1849_v21 = vpop.f32.mrf.mxu1 }
 0x7de   :  { %2359 = vmatmul.msk.bf16.gmra.mxu1 %vm4567_vm5, %v4424_v28 }
 0x7e3   :  { %v1851_v27 = vpop.f32.mrf.mxu1 }
 0x7eb   :  { %v1854_v45 = vpop.f32.mrf.mxu1 }
 0x7ee   :  { %2361 = vmatmul.msk.bf16.gmra.mxu1 %vm4568_vm8, %v4424_v28 }
 0x7f3   :  { %v1856_v32 = vpop.f32.mrf.mxu1 }
 0x7fb   :  { %v1859_v39 = vpop.f32.mrf.mxu1 }
 0x7fe   :  { %2363 = vmatmul.msk.bf16.gmra.mxu1 %vm4569_vm11, %v4424_v28 }
 0x803   :  { %v1861_v61 = vpop.f32.mrf.mxu1 }
 0x80b   :  { %v1864_v14 = vpop.f32.mrf.mxu1 }
 0x80e   :  { %2365 = vmatmul.msk.bf16.gmra.mxu1 %vm4570_vm14, %v4424_v28 }
 0x813   :  { %v1866_v15 = vpop.f32.mrf.mxu1 }
 0x81b   :  { %v1869_v42 = vpop.f32.mrf.mxu1 }
 0x81e   :  { %2367 = vmatmul.msk.bf16.gmra.mxu1 %vm4571_vm1, %v4424_v28 }
 0x823   :  { %v1871_v0 = vpop.f32.mrf.mxu1 }
 0x82b   :  { %v1874_v50 = vpop.f32.mrf.mxu1 }
 0x82c   :  { %v1914_v38 = vmul.f32 %v1874_v50, %v1834_v12 }
 0x82e   :  { %1930 = vadd.xlane.f32.xlu2 %v1914_v38 }
 0x833   :  { %v1876_v24 = vpop.f32.mrf.mxu1 }
 0x834   :  { %v1915_v9 = vmul.f32 %v1876_v24, %v1836_v4 }
 0x836   :  { %1932 = vadd.xlane.f32.xlu0 %v1915_v9 }
 0x83b   :  { %v1879_v5 = vpop.f32.mrf.mxu1 }
 0x83c   :  { %v1916_v54 = vmul.f32 %v1879_v5, %v1839_v56 }
 0x83e   :  { %1934 = vadd.xlane.f32.xlu1 %v1916_v54 }
 0x843   :  { %v1881_v44 = vpop.f32.mrf.mxu1 }
 0x844   :  { %v1917_v25 = vmul.f32 %v1881_v44, %v1841_v17 }
 0x846   :  { %1936 = vadd.xlane.f32.xlu2 %v1917_v25 }
 0x84b   :  { %v1884_v2 = vpop.f32.mrf.mxu1 }
 0x84c   :  { %v1918_v19 = vmul.f32 %v1884_v2, %v1844_v41 }
 0x84e   :  { %1938 = vadd.xlane.f32.xlu0 %v1918_v19 }
 0x853   :  { %v1886_v35 = vpop.f32.mrf.mxu1 }
 0x854   :  { %v1919_v51 = vmul.f32 %v1886_v35, %v1846_v36 }
 0x856   :  { %1940 = vadd.xlane.f32.xlu1 %v1919_v51 }
 0x85b   :  { %v1889_v28 = vpop.f32.mrf.mxu1 }
 0x85c   :  { %v1920_v26 = vmul.f32 %v1889_v28, %v1849_v21 }
 0x85e   :  { %1942 = vadd.xlane.f32.xlu2 %v1920_v26 }
 0x863   :  { %v1891_v16 = vpop.f32.mrf.mxu1 }
 0x864   :  { %v1921_v52 = vmul.f32 %v1891_v16, %v1851_v27 }
 0x866   :  { %1944 = vadd.xlane.f32.xlu0 %v1921_v52 }
 0x86b   :  { %v1894_v29 = vpop.f32.mrf.mxu1 }
 0x86c   :  { %v1922_v60 = vmul.f32 %v1894_v29, %v1854_v45 }
 0x86e   :  { %1946 = vadd.xlane.f32.xlu1 %v1922_v60 }
 0x873   :  { %v1896_v8 = vpop.f32.mrf.mxu1 }
 0x874   :  { %v1923_v57 = vmul.f32 %v1896_v8, %v1856_v32 }
 0x876   :  { %1948 = vadd.xlane.f32.xlu2 %v1923_v57 }
 0x87b   :  { %v1899_v63 = vpop.f32.mrf.mxu1 }
 0x87c   :  { %v1924_v43 = vmul.f32 %v1899_v63, %v1859_v39 }
 0x87e   :  { %1950 = vadd.xlane.f32.xlu0 %v1924_v43 }
 0x883   :  { %v1901_v40 = vpop.f32.mrf.mxu1 }
 0x884   :  { %v1925_v11 = vmul.f32 %v1901_v40, %v1861_v61 }
 0x886   :  { %1952 = vadd.xlane.f32.xlu1 %v1925_v11 }
 0x88b   :  { %v1904_v22 = vpop.f32.mrf.mxu1 }
 0x88c   :  { %v1926_v47 = vmul.f32 %v1904_v22, %v1864_v14 }
 0x88e   :  { %1954 = vadd.xlane.f32.xlu2 %v1926_v47 }
 0x893   :  { %v1906_v31 = vpop.f32.mrf.mxu1 }
 0x894   :  { %v1927_v20 = vmul.f32 %v1906_v31, %v1866_v15 }
 0x896   :  { %1956 = vadd.xlane.f32.xlu0 %v1927_v20 }
 0x89b   :  { %v1909_v53 = vpop.f32.mrf.mxu1 }
 0x89c   :  { %v1928_v49 = vmul.f32 %v1909_v53, %v1869_v42 }
 0x89e   :  { %1958 = vadd.xlane.f32.xlu1 %v1928_v49 }
 0x8a1   :  { %v1931_v48 = vpop.xlane.xlu2 %1930 }
 0x8a2   :  { %1962 = vst [vmem:[#allocation8] sm:$0xff] %v1931_v48 }
 0x8a3   :  { %v1911_v30 = vpop.f32.mrf.mxu1 }
 0x8a4   :  { %v1929_v58 = vmul.f32 %v1911_v30, %v1871_v0 }
 0x8a6   :  { %1960 = vadd.xlane.f32.xlu2 %v1929_v58 }
 0x8a9   :  { %v1933_v1 = vpop.xlane.xlu0 %1932 }
 0x8aa   :  { %1963 = vst [vmem:[#allocation8 + $0x8] sm:$0xff] %v1933_v1 }
 0x8b1   :  { %v1935_v18 = vpop.xlane.xlu1 %1934 }
 0x8b2   :  { %1964 = vst [vmem:[#allocation8 + $0x10] sm:$0xff] %v1935_v18 }
 0x8b9   :  { %v1937_v6 = vpop.xlane.xlu2 %1936 }
 0x8ba   :  { %1965 = vst [vmem:[#allocation8 + $0x18] sm:$0xff] %v1937_v6 }
 0x8c1   :  { %v1939_v62 = vpop.xlane.xlu0 %1938 }
 0x8c2   :  { %1966 = vst [vmem:[#allocation8 + $0x20] sm:$0xff] %v1939_v62 }
 0x8c9   :  { %v1941_v13 = vpop.xlane.xlu1 %1940 }
 0x8ca   :  { %1967 = vst [vmem:[#allocation8 + $0x28] sm:$0xff] %v1941_v13 }
 0x8d1   :  { %v1943_v46 = vpop.xlane.xlu2 %1942 }
 0x8d2   :  { %1968 = vst [vmem:[#allocation8 + $0x30] sm:$0xff] %v1943_v46 }
 0x8d9   :  { %v1945_v37 = vpop.xlane.xlu0 %1944 }
 0x8da   :  { %1969 = vst [vmem:[#allocation8 + $0x38] sm:$0xff] %v1945_v37 }
 0x8e1   :  { %v1947_v3 = vpop.xlane.xlu1 %1946 }
 0x8e2   :  { %1970 = vst [vmem:[#allocation8 + $0x40] sm:$0xff] %v1947_v3 }
 0x8e9   :  { %v1949_v33 = vpop.xlane.xlu2 %1948 }
 0x8ea   :  { %1971 = vst [vmem:[#allocation8 + $0x48] sm:$0xff] %v1949_v33 }
 0x8f1   :  { %v1951_v59 = vpop.xlane.xlu0 %1950 }
 0x8f2   :  { %1972 = vst [vmem:[#allocation8 + $0x50] sm:$0xff] %v1951_v59 }
 0x8f9   :  { %v1953_v34 = vpop.xlane.xlu1 %1952 }
 0x8fa   :  { %1973 = vst [vmem:[#allocation8 + $0x58] sm:$0xff] %v1953_v34 }
 0x901   :  { %v1955_v7 = vpop.xlane.xlu2 %1954 }
 0x902   :  { %1974 = vst [vmem:[#allocation8 + $0x60] sm:$0xff] %v1955_v7 }
 0x909   :  { %v1957_v55 = vpop.xlane.xlu0 %1956 }
 0x90a   :  { %1975 = vst [vmem:[#allocation8 + $0x68] sm:$0xff] %v1957_v55 }
 0x911   :  { %v1959_v23 = vpop.xlane.xlu1 %1958 }
 0x912   :  { %1976 = vst [vmem:[#allocation8 + $0x70] sm:$0xff] %v1959_v23 }
 0x919   :  { %v1961_v10 = vpop.xlane.xlu2 %1960 }
 0x91a   :  { %1977 = vst [vmem:[#allocation8 + $0x78] sm:$0xff] %v1961_v10 }
 0x91b   :  { %2003 = dma.vmem_to_hbm [thread:$0]  %s1996_s1, 2048, %s1998_s21, [#allocation9], %s2601_s19, %s2601_s19, %s2602_s20  }
 0x91c   :  { %2589 = dma.done.wait [#allocation4], 2048  }
 0x91d   :  { %2590 = vsyncadd [#allocation4], 4294965248 }
 0x91e   :  { %2591 = dma.done.wait [#allocation9], 2048  }
 0x91f   :  { %2592 = vsyncadd [#allocation9], 4294965248 }
 0x920   :  { %2012 = vsyncpa [#allocation3], 1 }
 0x921   :  { %2013 = vsyncpa [#allocation6], 1 }
 0x922   :  { %2014 = vsyncpa [#allocation4], 1 }
 0x923   :  { %2015 = vsyncpa [#allocation9], 1 }

</bundles_post_ra>
